<compile_context>
chip_gen: v7x
topology: tpu7x:2x2x1
jax: 0.10.0
libtpu: 0.0.40
codegen_flags: <defaults>
</compile_context>

<pallas_src>
import functools
import math

import jax
import jax.numpy as jnp
from jax.experimental import pallas as pl
from jax.experimental.pallas import tpu as pltpu

LANE = 128
SUBLANE = 8


def _round_up(x, m):
    return ((x + m - 1) // m) * m


def _pad_to(a, axis, size):
    pad = size - a.shape[axis]
    if pad <= 0:
        return a
    widths = [(0, 0)] * a.ndim
    widths[axis] = (0, pad)
    return jnp.pad(a, widths)


def _split_heads_pad(w, heads, dim_head, hd_p, head_axis):
    """Re-lay-out the `heads*dim_head` axis so each head occupies a hd_p-wide,
    lane-aligned slot (zero padded).  Inert for the math."""
    shp = list(w.shape)
    shp[head_axis:head_axis + 1] = [heads, dim_head]
    w = w.reshape(shp)
    pad = [(0, 0)] * w.ndim
    pad[head_axis + 1] = (0, hd_p - dim_head)
    w = jnp.pad(w, pad)
    shp2 = list(w.shape)
    shp2[head_axis:head_axis + 2] = [heads * hd_p]
    return w.reshape(shp2)


def cross_attn_kernel(x_ref, ctx_ref, wq_ref, wk_ref, wv_ref, wo_ref, bo_ref,
                      o_ref, *, heads, hd_p, scale, m_valid):
    # Block shapes: x_ref (1, n_p, dq_p), ctx_ref (1, m_p, dc_p), weights full.
    x = x_ref[0]                                   # (n_p, dq_p) f32
    c = ctx_ref[0]                                 # (m_p, dc_p) f32
    n_p = x.shape[0]
    m_p = c.shape[0]
    dq_p = wo_ref.shape[1]

    # Projections: one lane-dense MXU matmul each (padded rows of W are zero).
    q = jnp.dot(x, wq_ref[...], preferred_element_type=jnp.float32)   # (n_p, H*hd_p)
    k = jnp.dot(c, wk_ref[...], preferred_element_type=jnp.float32)   # (m_p, H*hd_p)
    v = jnp.dot(c, wv_ref[...], preferred_element_type=jnp.float32)   # (m_p, H*hd_p)
    q = q * scale                                  # single VPU scale, all heads at once

    # Key-padding mask only when the context length was actually padded.
    if m_valid != m_p:
        key_ok = jax.lax.broadcasted_iota(jnp.int32, (n_p, m_p), 1) < m_valid
    else:
        key_ok = None

    # Accumulate the output projection per head into a bias-initialised slab
    # (no concat / transpose; everything stays on the MXU).
    y = jnp.broadcast_to(bo_ref[...], (n_p, dq_p)).astype(jnp.float32)

    for h in range(heads):                         # heads is small & static -> unrolled
        lo = h * hd_p                              # 128-lane aligned slice starts
        qh = q[:, lo:lo + hd_p]                    # (n_p, hd_p)
        kh = k[:, lo:lo + hd_p]                    # (m_p, hd_p)
        vh = v[:, lo:lo + hd_p]                    # (m_p, hd_p)

        # q_h @ k_h^T without materialising a transpose.
        sim = jax.lax.dot_general(qh, kh, (((1,), (1,)), ((), ())),
                                  preferred_element_type=jnp.float32)  # (n_p, m_p)
        if key_ok is not None:
            sim = jnp.where(key_ok, sim, -1e30)
        sim = sim - jnp.max(sim, axis=-1, keepdims=True)              # stable softmax
        p = jnp.exp(sim)                                              # EUP
        attn = p / jnp.sum(p, axis=-1, keepdims=True)

        oh = jnp.dot(attn, vh, preferred_element_type=jnp.float32)    # (n_p, hd_p)
        y = y + jnp.dot(oh, wo_ref[lo:lo + hd_p, :],
                        preferred_element_type=jnp.float32)           # (n_p, dq_p)

    o_ref[0] = y.astype(o_ref.dtype)


def cross_attention_forward(x, context, wq, wk, wv, wo, bo, *, heads, dim_head):
    """x: (B, N, query_dim); context: (B, M, context_dim).
    Weights are pre-transposed to (in_features, out_features):
      wq (query_dim, inner), wk/wv (context_dim, inner), wo (inner, query_dim),
      bo (query_dim,). inner = heads * dim_head."""
    b, n, dq = x.shape
    _, m, dc = context.shape
    scale = dim_head ** -0.5

    # Lane / sublane padded sizes (all padding is mathematically inert).
    dq_p = _round_up(dq, LANE)
    dc_p = _round_up(dc, LANE)
    hd_p = _round_up(dim_head, LANE)           # per-head lane-aligned stride
    inner_p = heads * hd_p
    n_p = _round_up(n, SUBLANE)
    m_p = _round_up(m, SUBLANE)

    xp = _pad_to(_pad_to(x, 2, dq_p), 1, n_p)
    cp = _pad_to(_pad_to(context, 2, dc_p), 1, m_p)

    wq_p = _pad_to(_split_heads_pad(wq, heads, dim_head, hd_p, 1), 0, dq_p)
    wk_p = _pad_to(_split_heads_pad(wk, heads, dim_head, hd_p, 1), 0, dc_p)
    wv_p = _pad_to(_split_heads_pad(wv, heads, dim_head, hd_p, 1), 0, dc_p)
    wo_p = _pad_to(_split_heads_pad(wo, heads, dim_head, hd_p, 0), 1, dq_p)
    bo_p = _pad_to(bo.reshape(1, dq), 1, dq_p)

    kernel = functools.partial(cross_attn_kernel, heads=heads, hd_p=hd_p,
                               scale=scale, m_valid=m)

    flops = 2 * b * (n_p * dq_p * inner_p            # q proj
                     + 2 * m_p * dc_p * inner_p      # k, v proj
                     + heads * 2 * n_p * m_p * hd_p  # qk^T + attn@v
                     + n_p * inner_p * dq_p)         # out proj
    transcendentals = b * heads * n_p * m_p          # exp
    bytes_accessed = 4 * (xp.size + cp.size + wq_p.size + wk_p.size
                          + wv_p.size + wo_p.size + bo_p.size + b * n_p * dq_p)

    out_padded = pl.pallas_call(
        kernel,
        out_shape=jax.ShapeDtypeStruct((b, n_p, dq_p), jnp.float32),
        grid=(b,),
        in_specs=[
            pl.BlockSpec((1, n_p, dq_p), lambda i: (i, 0, 0)),   # x        (per batch)
            pl.BlockSpec((1, m_p, dc_p), lambda i: (i, 0, 0)),   # context  (per batch)
            pl.BlockSpec((dq_p, inner_p), lambda i: (0, 0)),     # Wq  (resident)
            pl.BlockSpec((dc_p, inner_p), lambda i: (0, 0)),     # Wk  (resident)
            pl.BlockSpec((dc_p, inner_p), lambda i: (0, 0)),     # Wv  (resident)
            pl.BlockSpec((inner_p, dq_p), lambda i: (0, 0)),     # Wo  (resident)
            pl.BlockSpec((1, dq_p), lambda i: (0, 0)),           # bo  (resident)
        ],
        out_specs=pl.BlockSpec((1, n_p, dq_p), lambda i: (i, 0, 0)),
        compiler_params=pltpu.CompilerParams(
            dimension_semantics=("parallel",),       # shard batch across TCs (v7x)
            vmem_limit_bytes=32 * 1024 * 1024,       # safe on v5e/v6e/v7x
        ),
        cost_estimate=pl.CostEstimate(flops=flops,
                                      transcendentals=transcendentals,
                                      bytes_accessed=bytes_accessed),
    )(xp, cp, wq_p, wk_p, wv_p, wo_p, bo_p)

    return out_padded[:, :n, :dq]      # drop sublane/lane padding


if __name__ == "__main__":
    B, N, M = 2, 8, 16                      # batch, query seq, context seq
    QUERY_DIM, CONTEXT_DIM = 32, 32
    HEADS, DIM_HEAD = 3, 64                 # module defaults
    INNER = HEADS * DIM_HEAD                # 192

    key = jax.random.PRNGKey(0)
    kx, kc, kq, kkv, kow, kob = jax.random.split(key, 6)

    x = jax.random.normal(kx, (B, N, QUERY_DIM), jnp.float32)
    context = jax.random.normal(kc, (B, M, CONTEXT_DIM), jnp.float32)

    # PyTorch nn.Linear weights are (out_features, in_features); build that way
    # then transpose in the glue so the kernel does plain x @ W.
    bq = 1.0 / math.sqrt(QUERY_DIM)
    wq_pt = jax.random.uniform(kq, (INNER, QUERY_DIM), jnp.float32, -bq, bq)       # to_q
    bkv = 1.0 / math.sqrt(CONTEXT_DIM)
    wkv_pt = jax.random.uniform(kkv, (2 * INNER, CONTEXT_DIM), jnp.float32, -bkv, bkv)  # to_kv
    bo_b = 1.0 / math.sqrt(INNER)
    wo_pt = jax.random.uniform(kow, (QUERY_DIM, INNER), jnp.float32, -bo_b, bo_b)  # to_out.weight
    bo = jax.random.uniform(kob, (QUERY_DIM,), jnp.float32, -bo_b, bo_b)           # to_out.bias

    wq = wq_pt.T                    # (QUERY_DIM, INNER)
    wk = wkv_pt[:INNER].T           # (CONTEXT_DIM, INNER)  -- first chunk of to_kv
    wv = wkv_pt[INNER:].T           # (CONTEXT_DIM, INNER)  -- second chunk
    wo = wo_pt.T                    # (INNER, QUERY_DIM)

    out = cross_attention_forward(x, context, wq, wk, wv, wo, bo,
                                  heads=HEADS, dim_head=DIM_HEAD)
    out = jax.block_until_ready(out)

    # Pure-JAX reference matching the PyTorch forward (mask=None, dropout=0).
    def ref(x, context):
        hp = jax.lax.Precision.HIGHEST
        q = jnp.einsum("bnd,df->bnf", x, wq, precision=hp)
        k = jnp.einsum("bmd,df->bmf", context, wk, precision=hp)
        v = jnp.einsum("bmd,df->bmf", context, wv, precision=hp)

        def split(t):
            b_, s_, _ = t.shape
            return t.reshape(b_, s_, HEADS, DIM_HEAD).transpose(0, 2, 1, 3)

        qh, kh, vh = split(q), split(k), split(v)
        sim = jnp.einsum("bhid,bhjd->bhij", qh, kh, precision=hp) * (DIM_HEAD ** -0.5)
        attn = jax.nn.softmax(sim, axis=-1)
        o = jnp.einsum("bhij,bhjd->bhid", attn, vh, precision=hp)
        o = o.transpose(0, 2, 1, 3).reshape(B, N, INNER)
        return jnp.einsum("bnf,fd->bnd", o, wo, precision=hp) + bo

    expected = ref(x, context)
    assert out.shape == (B, N, QUERY_DIM)
    err = float(jnp.max(jnp.abs(out - expected)))
    assert jnp.allclose(out, expected, atol=1e-4, rtol=1e-4), f"max abs err {err}"
    print("KERNEL_OK")
</pallas_src>

<mosaic_0001>
module attributes {stable_mosaic.version = 11 : i64} {
  func.func @cross_attn_kernel(%arg0: i32, %arg1: memref<1x8x128xf32, #tpu.memory_space<vmem>>, %arg2: memref<1x16x128xf32, #tpu.memory_space<vmem>>, %arg3: memref<128x384xf32, #tpu.memory_space<vmem>>, %arg4: memref<128x384xf32, #tpu.memory_space<vmem>>, %arg5: memref<128x384xf32, #tpu.memory_space<vmem>>, %arg6: memref<384x128xf32, #tpu.memory_space<vmem>>, %arg7: memref<1x128xf32, #tpu.memory_space<vmem>>, %arg8: memref<1x8x128xf32, #tpu.memory_space<vmem>>) attributes {dimension_semantics = [#tpu.dimension_semantics<parallel>], iteration_bounds = array<i64: 2>, scalar_prefetch = 0 : i64, scratch_operands = 0 : i64, tpu.core_type = #tpu.core_type<tc>, window_params = [{transform_indices = @transform_0, window_bounds = array<i64: 1, 8, 128>}, {transform_indices = @transform_1, window_bounds = array<i64: 1, 16, 128>}, {pipeline_mode = #tpu.pipeline_mode<synchronous>, transform_indices = @transform_2, window_bounds = array<i64: 128, 384>}, {pipeline_mode = #tpu.pipeline_mode<synchronous>, transform_indices = @transform_3, window_bounds = array<i64: 128, 384>}, {pipeline_mode = #tpu.pipeline_mode<synchronous>, transform_indices = @transform_4, window_bounds = array<i64: 128, 384>}, {pipeline_mode = #tpu.pipeline_mode<synchronous>, transform_indices = @transform_5, window_bounds = array<i64: 384, 128>}, {pipeline_mode = #tpu.pipeline_mode<synchronous>, transform_indices = @transform_6, window_bounds = array<i64: 1, 128>}, {transform_indices = @transform_7, window_bounds = array<i64: 1, 8, 128>}]} {
    %c0 = arith.constant 0 : index
    %c0_0 = arith.constant 0 : index
    %c0_1 = arith.constant 0 : index
    %0 = vector.load %arg1[%c0, %c0_0, %c0_1] : memref<1x8x128xf32, #tpu.memory_space<vmem>>, vector<1x8x128xf32>
    %1 = vector.shape_cast %0 : vector<1x8x128xf32> to vector<8x128xf32>
    %c0_2 = arith.constant 0 : index
    %c0_3 = arith.constant 0 : index
    %c0_4 = arith.constant 0 : index
    %2 = vector.load %arg2[%c0_2, %c0_3, %c0_4] : memref<1x16x128xf32, #tpu.memory_space<vmem>>, vector<1x16x128xf32>
    %3 = vector.shape_cast %2 : vector<1x16x128xf32> to vector<16x128xf32>
    %c0_5 = arith.constant 0 : index
    %c0_6 = arith.constant 0 : index
    %4 = vector.load %arg3[%c0_5, %c0_6] : memref<128x384xf32, #tpu.memory_space<vmem>>, vector<128x384xf32>
    %cst = arith.constant dense<0.000000e+00> : vector<8x384xf32>
    %5 = tpu.matmul %1, %4, %cst {dimension_numbers = #tpu.dot_dimension_numbers<[1], [0], [0], [1], [0, 0, 1, 1], [], []>} : vector<8x128xf32>, vector<128x384xf32>, vector<8x384xf32> -> vector<8x384xf32>
    %c0_7 = arith.constant 0 : index
    %c0_8 = arith.constant 0 : index
    %6 = vector.load %arg4[%c0_7, %c0_8] : memref<128x384xf32, #tpu.memory_space<vmem>>, vector<128x384xf32>
    %cst_9 = arith.constant dense<0.000000e+00> : vector<16x384xf32>
    %7 = tpu.matmul %3, %6, %cst_9 {dimension_numbers = #tpu.dot_dimension_numbers<[1], [0], [0], [1], [0, 0, 1, 1], [], []>} : vector<16x128xf32>, vector<128x384xf32>, vector<16x384xf32> -> vector<16x384xf32>
    %c0_10 = arith.constant 0 : index
    %c0_11 = arith.constant 0 : index
    %8 = vector.load %arg5[%c0_10, %c0_11] : memref<128x384xf32, #tpu.memory_space<vmem>>, vector<128x384xf32>
    %cst_12 = arith.constant dense<0.000000e+00> : vector<16x384xf32>
    %9 = tpu.matmul %3, %8, %cst_12 {dimension_numbers = #tpu.dot_dimension_numbers<[1], [0], [0], [1], [0, 0, 1, 1], [], []>} : vector<16x128xf32>, vector<128x384xf32>, vector<16x384xf32> -> vector<16x384xf32>
    %cst_13 = arith.constant 1.250000e-01 : f32
    %10 = vector.broadcast %cst_13 : f32 to vector<8x384xf32>
    %11 = arith.mulf %5, %10 : vector<8x384xf32>
    %c0_14 = arith.constant 0 : index
    %c0_15 = arith.constant 0 : index
    %12 = vector.load %arg7[%c0_14, %c0_15] : memref<1x128xf32, #tpu.memory_space<vmem>>, vector<1x128xf32>
    %13 = vector.shape_cast %12 : vector<1x128xf32> to vector<1x128xf32>
    %14 = vector.broadcast %13 : vector<1x128xf32> to vector<8x128xf32>
    %15 = vector.extract_strided_slice %11 {offsets = [0, 0], sizes = [8, 128], strides = [1, 1]} : vector<8x384xf32> to vector<8x128xf32>
    %16 = vector.extract_strided_slice %7 {offsets = [0, 0], sizes = [16, 128], strides = [1, 1]} : vector<16x384xf32> to vector<16x128xf32>
    %17 = vector.extract_strided_slice %9 {offsets = [0, 0], sizes = [16, 128], strides = [1, 1]} : vector<16x384xf32> to vector<16x128xf32>
    %cst_16 = arith.constant dense<0.000000e+00> : vector<8x16xf32>
    %18 = tpu.matmul %15, %16, %cst_16 {dimension_numbers = #tpu.dot_dimension_numbers<[1], [1], [0], [0], [0, 0, 1, 0], [], []>} : vector<8x128xf32>, vector<16x128xf32>, vector<8x16xf32> -> vector<8x16xf32>
    %cst_17 = arith.constant dense<0xFF800000> : vector<8xf32>
    %19 = vector.multi_reduction <maximumf>, %18, %cst_17 [1] : vector<8x16xf32> to vector<8xf32>
    %20 = vector.shape_cast %19 : vector<8xf32> to vector<8x1xf32>
    %21 = vector.broadcast %20 : vector<8x1xf32> to vector<8x16xf32>
    %22 = arith.subf %18, %21 : vector<8x16xf32>
    %23 = math.exp %22 : vector<8x16xf32>
    %cst_18 = arith.constant dense<0.000000e+00> : vector<8xf32>
    %24 = vector.multi_reduction <add>, %23, %cst_18 [1] : vector<8x16xf32> to vector<8xf32>
    %25 = vector.shape_cast %24 : vector<8xf32> to vector<8x1xf32>
    %26 = vector.broadcast %25 : vector<8x1xf32> to vector<8x16xf32>
    %27 = arith.divf %23, %26 : vector<8x16xf32>
    %cst_19 = arith.constant dense<0.000000e+00> : vector<8x128xf32>
    %28 = tpu.matmul %27, %17, %cst_19 {dimension_numbers = #tpu.dot_dimension_numbers<[1], [0], [0], [1], [0, 0, 1, 1], [], []>} : vector<8x16xf32>, vector<16x128xf32>, vector<8x128xf32> -> vector<8x128xf32>
    %c0_20 = arith.constant 0 : index
    %c0_21 = arith.constant 0 : index
    %29 = vector.load %arg6[%c0_20, %c0_21] : memref<384x128xf32, #tpu.memory_space<vmem>>, vector<128x128xf32>
    %cst_22 = arith.constant dense<0.000000e+00> : vector<8x128xf32>
    %30 = tpu.matmul %28, %29, %cst_22 {dimension_numbers = #tpu.dot_dimension_numbers<[1], [0], [0], [1], [0, 0, 1, 1], [], []>} : vector<8x128xf32>, vector<128x128xf32>, vector<8x128xf32> -> vector<8x128xf32>
    %31 = arith.addf %14, %30 : vector<8x128xf32>
    %32 = vector.extract_strided_slice %11 {offsets = [0, 128], sizes = [8, 128], strides = [1, 1]} : vector<8x384xf32> to vector<8x128xf32>
    %33 = vector.extract_strided_slice %7 {offsets = [0, 128], sizes = [16, 128], strides = [1, 1]} : vector<16x384xf32> to vector<16x128xf32>
    %34 = vector.extract_strided_slice %9 {offsets = [0, 128], sizes = [16, 128], strides = [1, 1]} : vector<16x384xf32> to vector<16x128xf32>
    %cst_23 = arith.constant dense<0.000000e+00> : vector<8x16xf32>
    %35 = tpu.matmul %32, %33, %cst_23 {dimension_numbers = #tpu.dot_dimension_numbers<[1], [1], [0], [0], [0, 0, 1, 0], [], []>} : vector<8x128xf32>, vector<16x128xf32>, vector<8x16xf32> -> vector<8x16xf32>
    %cst_24 = arith.constant dense<0xFF800000> : vector<8xf32>
    %36 = vector.multi_reduction <maximumf>, %35, %cst_24 [1] : vector<8x16xf32> to vector<8xf32>
    %37 = vector.shape_cast %36 : vector<8xf32> to vector<8x1xf32>
    %38 = vector.broadcast %37 : vector<8x1xf32> to vector<8x16xf32>
    %39 = arith.subf %35, %38 : vector<8x16xf32>
    %40 = math.exp %39 : vector<8x16xf32>
    %cst_25 = arith.constant dense<0.000000e+00> : vector<8xf32>
    %41 = vector.multi_reduction <add>, %40, %cst_25 [1] : vector<8x16xf32> to vector<8xf32>
    %42 = vector.shape_cast %41 : vector<8xf32> to vector<8x1xf32>
    %43 = vector.broadcast %42 : vector<8x1xf32> to vector<8x16xf32>
    %44 = arith.divf %40, %43 : vector<8x16xf32>
    %cst_26 = arith.constant dense<0.000000e+00> : vector<8x128xf32>
    %45 = tpu.matmul %44, %34, %cst_26 {dimension_numbers = #tpu.dot_dimension_numbers<[1], [0], [0], [1], [0, 0, 1, 1], [], []>} : vector<8x16xf32>, vector<16x128xf32>, vector<8x128xf32> -> vector<8x128xf32>
    %c128 = arith.constant 128 : index
    %c0_27 = arith.constant 0 : index
    %46 = vector.load %arg6[%c128, %c0_27] : memref<384x128xf32, #tpu.memory_space<vmem>>, vector<128x128xf32>
    %cst_28 = arith.constant dense<0.000000e+00> : vector<8x128xf32>
    %47 = tpu.matmul %45, %46, %cst_28 {dimension_numbers = #tpu.dot_dimension_numbers<[1], [0], [0], [1], [0, 0, 1, 1], [], []>} : vector<8x128xf32>, vector<128x128xf32>, vector<8x128xf32> -> vector<8x128xf32>
    %48 = arith.addf %31, %47 : vector<8x128xf32>
    %49 = vector.extract_strided_slice %11 {offsets = [0, 256], sizes = [8, 128], strides = [1, 1]} : vector<8x384xf32> to vector<8x128xf32>
    %50 = vector.extract_strided_slice %7 {offsets = [0, 256], sizes = [16, 128], strides = [1, 1]} : vector<16x384xf32> to vector<16x128xf32>
    %51 = vector.extract_strided_slice %9 {offsets = [0, 256], sizes = [16, 128], strides = [1, 1]} : vector<16x384xf32> to vector<16x128xf32>
    %cst_29 = arith.constant dense<0.000000e+00> : vector<8x16xf32>
    %52 = tpu.matmul %49, %50, %cst_29 {dimension_numbers = #tpu.dot_dimension_numbers<[1], [1], [0], [0], [0, 0, 1, 0], [], []>} : vector<8x128xf32>, vector<16x128xf32>, vector<8x16xf32> -> vector<8x16xf32>
    %cst_30 = arith.constant dense<0xFF800000> : vector<8xf32>
    %53 = vector.multi_reduction <maximumf>, %52, %cst_30 [1] : vector<8x16xf32> to vector<8xf32>
    %54 = vector.shape_cast %53 : vector<8xf32> to vector<8x1xf32>
    %55 = vector.broadcast %54 : vector<8x1xf32> to vector<8x16xf32>
    %56 = arith.subf %52, %55 : vector<8x16xf32>
    %57 = math.exp %56 : vector<8x16xf32>
    %cst_31 = arith.constant dense<0.000000e+00> : vector<8xf32>
    %58 = vector.multi_reduction <add>, %57, %cst_31 [1] : vector<8x16xf32> to vector<8xf32>
    %59 = vector.shape_cast %58 : vector<8xf32> to vector<8x1xf32>
    %60 = vector.broadcast %59 : vector<8x1xf32> to vector<8x16xf32>
    %61 = arith.divf %57, %60 : vector<8x16xf32>
    %cst_32 = arith.constant dense<0.000000e+00> : vector<8x128xf32>
    %62 = tpu.matmul %61, %51, %cst_32 {dimension_numbers = #tpu.dot_dimension_numbers<[1], [0], [0], [1], [0, 0, 1, 1], [], []>} : vector<8x16xf32>, vector<16x128xf32>, vector<8x128xf32> -> vector<8x128xf32>
    %c256 = arith.constant 256 : index
    %c0_33 = arith.constant 0 : index
    %63 = vector.load %arg6[%c256, %c0_33] : memref<384x128xf32, #tpu.memory_space<vmem>>, vector<128x128xf32>
    %cst_34 = arith.constant dense<0.000000e+00> : vector<8x128xf32>
    %64 = tpu.matmul %62, %63, %cst_34 {dimension_numbers = #tpu.dot_dimension_numbers<[1], [0], [0], [1], [0, 0, 1, 1], [], []>} : vector<8x128xf32>, vector<128x128xf32>, vector<8x128xf32> -> vector<8x128xf32>
    %65 = arith.addf %48, %64 : vector<8x128xf32>
    %c0_35 = arith.constant 0 : index
    %c0_36 = arith.constant 0 : index
    %c0_37 = arith.constant 0 : index
    %66 = vector.load %arg8[%c0_35, %c0_36, %c0_37] : memref<1x8x128xf32, #tpu.memory_space<vmem>>, vector<1x8x128xf32>
    %67 = vector.shape_cast %66 : vector<1x8x128xf32> to vector<8x128xf32>
    %68 = vector.shape_cast %65 : vector<8x128xf32> to vector<1x8x128xf32>
    tpu.vector_store %arg8[%c0_35, %c0_36, %c0_37], %68 {strides = array<i32>} : memref<1x8x128xf32, #tpu.memory_space<vmem>>, vector<1x8x128xf32>,
    return
  }
  func.func @transform_0(%arg0: i32) -> (i32, i32, i32) {
    %c0_i32 = arith.constant 0 : i32
    %c0_i32_0 = arith.constant 0 : i32
    %c0_i32_1 = arith.constant 0 : i32
    return %arg0, %c0_i32, %c0_i32_0 : i32, i32, i32
  }
  func.func @transform_1(%arg0: i32) -> (i32, i32, i32) {
    %c0_i32 = arith.constant 0 : i32
    %c0_i32_0 = arith.constant 0 : i32
    %c0_i32_1 = arith.constant 0 : i32
    return %arg0, %c0_i32, %c0_i32_0 : i32, i32, i32
  }
  func.func @transform_2(%arg0: i32) -> (i32, i32) {
    %c0_i32 = arith.constant 0 : i32
    %c0_i32_0 = arith.constant 0 : i32
    %c0_i32_1 = arith.constant 0 : i32
    return %c0_i32, %c0_i32_0 : i32, i32
  }
  func.func @transform_3(%arg0: i32) -> (i32, i32) {
    %c0_i32 = arith.constant 0 : i32
    %c0_i32_0 = arith.constant 0 : i32
    %c0_i32_1 = arith.constant 0 : i32
    return %c0_i32, %c0_i32_0 : i32, i32
  }
  func.func @transform_4(%arg0: i32) -> (i32, i32) {
    %c0_i32 = arith.constant 0 : i32
    %c0_i32_0 = arith.constant 0 : i32
    %c0_i32_1 = arith.constant 0 : i32
    return %c0_i32, %c0_i32_0 : i32, i32
  }
  func.func @transform_5(%arg0: i32) -> (i32, i32) {
    %c0_i32 = arith.constant 0 : i32
    %c0_i32_0 = arith.constant 0 : i32
    %c0_i32_1 = arith.constant 0 : i32
    return %c0_i32, %c0_i32_0 : i32, i32
  }
  func.func @transform_6(%arg0: i32) -> (i32, i32) {
    %c0_i32 = arith.constant 0 : i32
    %c0_i32_0 = arith.constant 0 : i32
    %c0_i32_1 = arith.constant 0 : i32
    return %c0_i32, %c0_i32_0 : i32, i32
  }
  func.func @transform_7(%arg0: i32) -> (i32, i32, i32) {
    %c0_i32 = arith.constant 0 : i32
    %c0_i32_0 = arith.constant 0 : i32
    %c0_i32_1 = arith.constant 0 : i32
    return %arg0, %c0_i32, %c0_i32_0 : i32, i32, i32
  }
}

</mosaic_0001>

<bundles_post_ra>
// kernel: tpu_custom_call.1
= control target key start
LH: loop header
LB: loop body
LE: loop exit
PB: predicated region body
PF: predicated region fallthrough
CT: control target
= control target key end

     0   :  { %s3417_s0 = inlined_call_operand.hbm [shape: f32[2,8,128], index: 0, kind: input, shape index: {}]   ;;  %s3418_s1 = inlined_call_operand.hbm [shape: f32[2,16,128], index: 1, kind: input, shape index: {}]   ;;  %s3419_s2 = inlined_call_operand.hbm [shape: f32[128,384], index: 2, kind: input, shape index: {}]   ;;  %s3420_s3 = inlined_call_operand.hbm [shape: f32[128,384], index: 3, kind: input, shape index: {}]   ;;  %s3421_s4 = inlined_call_operand.hbm [shape: f32[128,384], index: 4, kind: input, shape index: {}]   ;;  %s3422_s5 = inlined_call_operand.hbm [shape: f32[384,128], index: 5, kind: input, shape index: {}]   ;;  %s3423_s6 = inlined_call_operand.vmem [shape: f32[1,128], index: 6, kind: input, shape index: {}]   ;;  %s3424_s7 = inlined_call_operand.hbm [shape: f32[2,8,128], index: 7, kind: output, shape index: {}]  }
   0x1   :  { %3430 = sst [smem:[#allocation20_spill]] %s3417_s0 }
   0x2   :  { %3431 = sst [smem:[#allocation21_spill]] %s3419_s2 }
   0x3   :  { %3432 = sst [smem:[#allocation22_spill]] %s3420_s3 }
   0x4   :  { %12 = vsyncpa [#allocation3], 0 }
   0x5   :  { %14 = vsyncpa [#allocation3 + $0x1], 0 }
   0x6   :  { %15 = vsyncpa [#allocation6], 0 }
   0x7   :  { %17 = vsyncpa [#allocation6 + $0x1], 0 }
   0x8   :  { %18 = vsyncpa [#allocation9], 0 }
   0x9   :  { %19 = vsyncpa [#allocation12], 0 }
   0xa   :  { %20 = vsyncpa [#allocation4], 0 }
   0xb   :  { %22 = vsyncpa [#allocation4 + $0x1], 0  ;;  %s2967_s24 = smov 0   ;;  %s2969_s25 = smov 0  }
   0xc   :  { %s2971_s26 = smov 0   ;;  %s2973_s27 = smov 0  }
   0xd LB: > { %s2913_s28 = smov [#allocation7]   ;;  %s2988_s30 = sadd.s32 4294967295, %s2911_s27   ;;  %s2911_s27 = sphi %s2973_s27, %s3461_s27   ;;  %s2907_s26 = sphi %s2971_s26, %s3460_s26   ;;  %s2903_s25 = sphi %s2969_s25, %s3459_s25   ;;  %s2899_s24 = sphi %s2967_s24, %s3458_s24  }
   0xe   : > { %s228_s29 = sshll.u32 %s2913_s28, 4  ;;  %p1865_p0 = scmp.ge.s32.totalorder %s2911_s27, 1  ;;  %s2993_s29 = int_to_ptr.vmem [resolvable:$true] %s228_s29 }
   0xf   : > { %p3425_p1 = scmp.eq.s32.totalorder %s2988_s30, 0  ;;  %p216_p2 = scmp.lt.s32.totalorder %s2911_s27, 3 }
  0x10   : > { %s2914_s9 = smov [#allocation8]   ;;  %s2915_s12 = smov [#allocation10]  }
  0x11   : > { %p2995_p3 = pnand %p1865_p0, %p216_p2  ;;  %s241_s10 = sshll.u32 %s2914_s9, 4  ;;  %s3008_s10 = int_to_ptr.vmem [resolvable:$true] %s241_s10 }
  0x12   : > { %s254_s13 = sshll.u32 %s2915_s12, 4  ;;  %s3435_s2 = sld [smem:[#allocation21_spill]]  ;;  %s3010_s13 = int_to_ptr.vmem [resolvable:$true] %s254_s13 }
  0x13   : > { %s3433_s8 = scalar_select %p2995_p3, 1, 0 }
  0x14   : > { %p2568_p5 = pneg %p2995_p3 }
  0x16   : > { %p3004_p6 = pnand %p2568_p5, %p3425_p1 }
  0x18   : > { %s2657_s16 = scalar_lea.hbm %s3435_s2, 6144  ;;  %p3020_p8 = pneg %p3004_p6 }
  0x19   : > { %p2658_p7 = scmp.ne.s32.totalorder %s3435_s2, %s2657_s16  ;;  %p2664_p11 = scmp.lt.u32.totalorder %s2657_s16, %s3435_s2 }
  0x1b   : > { %p2660_p9 = pnand %p3020_p8, %p2658_p7 }
  0x1d   : > { %p2661_p10 = pneg %p2660_p9 }
  0x1f   : > { %p2666_p12 = pnand %p2664_p11, %p2661_p10 }
  0x21   : > { %2669 = shalt.err (!%p2666_p12)
}
  0x22   : > { %s2670_s22 = scalar_lea.vmem %s2993_s29, 6144  ;;  %p2678_p5 = scmp.lt.s32.totalorder %s2993_s29, %s2993_s29 }
  0x23   : > { %p2671_p13 = scmp.ne.s32.totalorder %s2993_s29, %s2670_s22  ;;  %p2679_p4 = scmp.lt.s32.totalorder %s2670_s22, %s2670_s22 }
  0x25   : > { %p2673_p0 = pnand %p2671_p13, %p3020_p8  ;;  %p2680_p7 = por %p2679_p4, %p2678_p5 }
  0x27   : > { %p2674_p2 = pneg %p2673_p0 }
  0x29   : > { %p2681_p9 = pnand %p2680_p7, %p2674_p2 }
  0x2b   : > { %2684 = shalt.err (!%p2681_p9)
}
  0x2c   : > { %s2916_s23 = smov 384   ;;  %s2917_s28 = smov 24  }
  0x2d   : > { %2571 = dma.hbm_to_vmem [thread:$0]  (!%p3004_p6), %s3435_s2, 6144, %s2993_s29, [#allocation6], %s2916_s23, %s2916_s23, %s2917_s28  }
  0x2e   : > { %s3437_s3 = sld [smem:[#allocation22_spill]] }
  0x34   : > { %s2685_s16 = scalar_lea.hbm %s3437_s3, 6144 }
  0x35   : > { %p2686_p4 = scmp.ne.s32.totalorder %s3437_s3, %s2685_s16  ;;  %p2692_p12 = scmp.lt.u32.totalorder %s2685_s16, %s3437_s3 }
  0x37   : > { %p2688_p10 = pnand %p2686_p4, %p3020_p8 }
  0x39   : > { %p2689_p11 = pneg %p2688_p10 }
  0x3b   : > { %p2694_p13 = pnand %p2692_p12, %p2689_p11 }
  0x3d   : > { %2697 = shalt.err (!%p2694_p13)
}
  0x3e   : > { %s2698_s29 = scalar_lea.vmem %s3008_s10, 6144  ;;  %p2706_p7 = scmp.lt.s32.totalorder %s3008_s10, %s3008_s10 }
  0x3f   : > { %p2699_p0 = scmp.ne.s32.totalorder %s3008_s10, %s2698_s29  ;;  %p2707_p9 = scmp.lt.s32.totalorder %s2698_s29, %s2698_s29 }
  0x41   : > { %p2701_p2 = pnand %p2699_p0, %p3020_p8  ;;  %p2708_p4 = por %p2707_p9, %p2706_p7 }
  0x43   : > { %p2702_p5 = pneg %p2701_p2 }
  0x45   : > { %p2709_p10 = pnand %p2708_p4, %p2702_p5 }
  0x47   : > { %2712 = shalt.err (!%p2709_p10)
}
  0x48   : > { %2574 = dma.hbm_to_vmem [thread:$0]  (!%p3004_p6), %s3437_s3, 6144, %s3008_s10, [#allocation9], %s2916_s23, %s2916_s23, %s2917_s28  }
  0x49   : > { %s2713_s15 = scalar_lea.hbm %s3421_s4, 6144 }
  0x4a   : > { %p2714_p11 = scmp.ne.s32.totalorder %s3421_s4, %s2713_s15  ;;  %p2720_p0 = scmp.lt.u32.totalorder %s2713_s15, %s3421_s4 }
  0x4c   : > { %p2716_p12 = pnand %p2714_p11, %p3020_p8 }
  0x4e   : > { %p2717_p13 = pneg %p2716_p12 }
  0x50   : > { %p2722_p2 = pnand %p2720_p0, %p2717_p13 }
  0x52   : > { %2725 = shalt.err (!%p2722_p2)
}
  0x53   : > { %s2726_s10 = scalar_lea.vmem %s3010_s13, 6144  ;;  %p2734_p4 = scmp.lt.s32.totalorder %s3010_s13, %s3010_s13 }
  0x54   : > { %p2727_p5 = scmp.ne.s32.totalorder %s3010_s13, %s2726_s10  ;;  %p2735_p10 = scmp.lt.s32.totalorder %s2726_s10, %s2726_s10 }
  0x56   : > { %p2729_p7 = pnand %p2727_p5, %p3020_p8  ;;  %p2736_p11 = por %p2735_p10, %p2734_p4 }
  0x58   : > { %p2730_p9 = pneg %p2729_p7 }
  0x5a   : > { %p2737_p12 = pnand %p2736_p11, %p2730_p9 }
  0x5c   : > { %2740 = shalt.err (!%p2737_p12)
}
  0x5d   : > { %2577 = dma.hbm_to_vmem [thread:$0]  (!%p3004_p6), %s3421_s4, 6144, %s3010_s13, [#allocation9], %s2916_s23, %s2916_s23, %s2917_s28  }
  0x5e   : > { %s2918_s22 = smov [#allocation11]   ;;  %s2741_s15 = scalar_lea.hbm %s3422_s5, 6144 }
  0x5f   : > { %s267_s9 = sshll.u32 %s2918_s22, 4  ;;  %p2742_p13 = scmp.ne.s32.totalorder %s3422_s5, %s2741_s15  ;;  %s268_s9 = int_to_ptr.vmem [resolvable:$true] %s267_s9 }
  0x60   : > { %p2748_p5 = scmp.lt.u32.totalorder %s2741_s15, %s3422_s5 }
  0x61   : > { %p2744_p0 = pnand %p2742_p13, %p3020_p8 }
  0x63   : > { %p2745_p2 = pneg %p2744_p0 }
  0x65   : > { %p2750_p7 = pnand %p2748_p5, %p2745_p2 }
  0x67   : > { %2753 = shalt.err (!%p2750_p7)
}
  0x68   : > { %s2754_s13 = scalar_lea.vmem %s268_s9, 6144  ;;  %p2762_p11 = scmp.lt.s32.totalorder %s268_s9, %s268_s9 }
  0x69   : > { %p2755_p9 = scmp.ne.s32.totalorder %s268_s9, %s2754_s13  ;;  %p2763_p12 = scmp.lt.s32.totalorder %s2754_s13, %s2754_s13 }
  0x6b   : > { %p2757_p4 = pnand %p2755_p9, %p3020_p8  ;;  %p2764_p1 = por %p2763_p12, %p2762_p11 }
  0x6d   : > { %p2758_p10 = pneg %p2757_p4 }
  0x6f   : > { %p2765_p3 = pnand %p2764_p1, %p2758_p10 }
  0x71   : > { %2768 = shalt.err (!%p2765_p3)
}
  0x72   : > { %s3427_s23 = smov 128   ;;  %s3428_s19 = smov 8  }
  0x73   : > { %2580 = dma.hbm_to_vmem [thread:$0]  (!%p3004_p6), %s3422_s5, 6144, %s268_s9, [#allocation12], %s3427_s23, %s3427_s23, %s3428_s19  }
  0x74   : > { %s1864_s21 = sadd.s32 4294967294, %s2911_s27   ;;  %s3119_s29 = sadd.s32 1, %s2911_s27  }
  0x75   : > { %s32_s22 = ssub.s32 %s2911_s27, %s3119_s29  ;;  %s35_s12 = sadd.s32 1, %s2907_s26 }
  0x76   : > { %p33_p1 = scmp.eq.s32.totalorder %s32_s22, 0  ;;  %p42_p3 = scmp.ne.s32.totalorder %s2907_s26, %s2903_s25 }
  0x77   : > { %p43_p8 = scmp.eq.s32.totalorder %s2911_s27, 0  ;;  %p48_p13 = scmp.ne.s32.totalorder %s2903_s25, %s2899_s24 }
  0x78   : > { %s3130_s11 = scalar_select %p33_p1, %s2907_s26, %s35_s12  }
  0x79   : > { %p3132_p0 = por %p43_p8, %p42_p3  ;;  %p3439_p2 = scmp.eq.s32.totalorder %s2988_s30, 0 }
  0x7a   : > { %p203_p5 = scmp.eq.s32.totalorder %s2988_s30, 1  ;;  %p209_p7 = scmp.eq.s32.totalorder %s1864_s21, 1 }
  0x7b   : > { %p3138_p6 = por %p3439_p2, %p48_p13  ;;  %p2596_p9 = scmp.lt.s32.totalorder %s2911_s27, 2 }
  0x7c   : > { %s3145_s15 = sand.u32 1, %s2907_s26   ;;  %p3147_p4 = por %p203_p5, %p42_p3 }
  0x7d   : > { %p3151_p10 = por %p209_p7, %p48_p13  ;;  %s1871_s18 = sshll.u32 %s3145_s15, 3 }
  0x7e   : > { %s3441_s16 = scalar_select %p3147_p4, 1, 0 }
  0x7f   : > { %s3442_s17 = scalar_select %p3151_p10, 1, 0 }
  0x80   : > { %s1872_s20 = sshll.u32 %s2911_s27, 7  ;;  %s3443_s0 = sld [smem:[#allocation20_spill]] }
  0x81   : > { %s288_s21 = scalar_lea.vmem [#allocation2], %s1871_s18  ;;  %p3166_p11 = pnand %p2596_p9, %p3132_p0 }
  0x82   : > { %s295_s22 = sshll.u32 %s288_s21, 4  ;;  %s1873_s23 = sshll.u32 %s3145_s15, 4  ;;  %s3162_s22 = int_to_ptr.vmem [resolvable:$true] %s295_s22 }
  0x83   : > { %s285_s13 = scalar_lea.sflag [#allocation3], %s3145_s15  ;;  %p2771_p1 = pneg %p3166_p11 }
  0x86   : > { %s3160_s10 = scalar_lea.hbm %s3443_s0, %s1872_s20  ;;  %s2774_s14 = scalar_lea.hbm %s3443_s0, 256 }
  0x87   : > { %s2769_s20 = scalar_lea.hbm %s3160_s10, 128  ;;  %p2775_p13 = scmp.lt.u32.totalorder %s3160_s10, %s3443_s0 }
  0x88   : > { %p2770_p12 = scmp.ne.s32.totalorder %s3160_s10, %s2769_s20  ;;  %p2776_p0 = scmp.lt.u32.totalorder %s2774_s14, %s2769_s20 }
  0x89   : > { %p2778_p5 = scmp.lt.u32.totalorder %s2769_s20, %s3160_s10 }
  0x8a   : > { %p2772_p3 = pnand %p2771_p1, %p2770_p12  ;;  %p2777_p2 = por %p2776_p0, %p2775_p13 }
  0x8c   : > { %p2773_p8 = pneg %p2772_p3  ;;  %p2779_p7 = por %p2778_p5, %p2777_p2 }
  0x8e   : > { %p2780_p9 = pnand %p2779_p7, %p2773_p8 }
  0x90   : > { %2783 = shalt.err (!%p2780_p9)
}
  0x91   : > { %s2784_s19 = scalar_lea.vmem %s3162_s22, 128  ;;  %s2921_s18 = smov [#allocation2]  }
  0x92   : > { %p2785_p12 = scmp.ne.s32.totalorder %s3162_s22, %s2784_s19  ;;  %s2789_s28 = sshll.u32 %s2921_s18, 4  ;;  %s2790_s28 = int_to_ptr.vmem [resolvable:$false] %s2789_s28 }
  0x93   : > { %s2791_s2 = scalar_lea.vmem %s2790_s28, 256  ;;  %p2792_p4 = scmp.lt.s32.totalorder %s3162_s22, %s2790_s28 }
  0x94   : > { %p2787_p3 = pnand %p2785_p12, %p2771_p1  ;;  %p2793_p13 = scmp.lt.s32.totalorder %s2791_s2, %s2784_s19 }
  0x96   : > { %p2788_p10 = pneg %p2787_p3  ;;  %p2794_p0 = por %p2793_p13, %p2792_p4 }
  0x98   : > { %p2795_p2 = pnand %p2794_p0, %p2788_p10 }
  0x9a   : > { %2798 = shalt.err (!%p2795_p2)
}
  0x9b   : > { %2584 = dma.hbm_to_vmem [thread:$0]  (!%p3166_p11), %s3160_s10, 128, %s3162_s22, %s285_s13  }
  0x9c   : > { %s306_s20 = scalar_lea.vmem [#allocation5], %s1873_s23  ;;  %s1892_s21 = sshll.u32 %s2911_s27, 8 }
  0x9d   : > { %s313_s14 = sshll.u32 %s306_s20, 4  ;;  %s3206_s28 = scalar_lea.hbm %s3418_s1, %s1892_s21  ;;  %s3200_s14 = int_to_ptr.vmem [resolvable:$true] %s313_s14 }
  0x9e   : > { %s3445_s2 = sand.u32 1, %s2911_s27   ;;  %s2799_s3 = scalar_lea.hbm %s3206_s28, 256 }
  0x9f   : > { %s3210_s0 = scalar_lea.sflag [#allocation6], %s3445_s2  ;;  %p2800_p4 = scmp.ne.s32.totalorder %s3206_s28, %s2799_s3 }
  0xa0   : > { %s2804_s10 = scalar_lea.hbm %s3418_s1, 512  ;;  %p2805_p5 = scmp.lt.u32.totalorder %s3206_s28, %s3418_s1 }
  0xa1   : > { %p2802_p10 = pnand %p2800_p4, %p2771_p1  ;;  %p2806_p7 = scmp.lt.u32.totalorder %s2804_s10, %s2799_s3 }
  0xa2   : > { %p2808_p12 = scmp.lt.u32.totalorder %s2799_s3, %s3206_s28 }
  0xa3   : > { %p2803_p8 = pneg %p2802_p10  ;;  %p2807_p9 = por %p2806_p7, %p2805_p5 }
  0xa5   : > { %p2809_p3 = por %p2808_p12, %p2807_p9 }
  0xa7   : > { %p2810_p13 = pnand %p2809_p3, %p2803_p8 }
  0xa9   : > { %2813 = shalt.err (!%p2810_p13)
}
  0xaa   : > { %s2814_s20 = scalar_lea.vmem %s3200_s14, 256  ;;  %s2922_s21 = smov [#allocation5]  }
  0xab   : > { %p2815_p0 = scmp.ne.s32.totalorder %s3200_s14, %s2814_s20  ;;  %s2819_s18 = sshll.u32 %s2922_s21, 4  ;;  %s2820_s18 = int_to_ptr.vmem [resolvable:$false] %s2819_s18 }
  0xac   : > { %s2821_s19 = scalar_lea.vmem %s2820_s18, 512  ;;  %p2822_p10 = scmp.lt.s32.totalorder %s3200_s14, %s2820_s18 }
  0xad   : > { %p2817_p2 = pnand %p2815_p0, %p2771_p1  ;;  %p2823_p5 = scmp.lt.s32.totalorder %s2821_s19, %s2814_s20 }
  0xaf   : > { %p2818_p4 = pneg %p2817_p2  ;;  %p2824_p7 = por %p2823_p5, %p2822_p10 }
  0xb1   : > { %p2825_p9 = pnand %p2824_p7, %p2818_p4 }
  0xb3   : > { %2828 = shalt.err (!%p2825_p9)
}
  0xb4   : > { %s3446_s3 = smov 8   ;;  %s3447_s2 = smov 128  }
  0xb5   : > { %2587 = dma.hbm_to_vmem [thread:$0]  (!%p3166_p11), %s3206_s28, 256, %s3200_s14, %s3210_s0, %s3447_s2, %s3447_s2, %s3446_s3  }
  0xb6   : > { %p3448_p1 = scmp.ne.s32.totalorder %s3433_s8, 0 }
  0xb7   : > { %s3242_s23 = sand.u32 (!%p3448_p1), 1, %s2903_s25  }
  0xb8   : > { %325 = sbr.rel (%p3448_p1) target bundleno = 2037 (0x7f5), region = 48  ;;  %s1877_s15 = sshll.u32 (!%p3448_p1), %s3242_s23, 3 }
  0xb9   : > { %s328_s10 = scalar_lea.sflag (!%p3448_p1), [#allocation3], %s3242_s23  ;;  %s3248_s12 = scalar_lea.vmem (!%p3448_p1), [#allocation2], %s1877_s15 }
  0xbf   : > { %2874 = dma.done.wait (%p3138_p6), %s328_s10, 128  }
  0xc0   : > { %2876 = vsyncadd (%p3138_p6), %s328_s10, 4294967168  ;;  %s336_s0 = sand.u32 1, %s2988_s30   ;;  %s1878_s8 = sshll.u32 %s3242_s23, 4 }
  0xc1   : > { %s337_s14 = scalar_lea.sflag [#allocation6], %s336_s0  ;;  %s3256_s28 = scalar_lea.vmem [#allocation5], %s1878_s8 }
  0xc2   : > { %2878 = dma.done.wait (%p3138_p6), %s337_s14, 256  }
  0xc3   : > { %2880 = vsyncadd (%p3138_p6), %s337_s14, 4294967040  ;;  %p3449_p11 = scmp.eq.s32.totalorder %s2988_s30, 0 }
  0xc5   : > { %2882 = dma.done.wait (%p3449_p11), [#allocation6], 6144   ;;  %p3450_p8 = pmov %p3449_p11 }
  0xc7   : > { %2884 = vsyncadd (%p3450_p8), [#allocation6], 4294961152  ;;  %p3451_p12 = pmov %p3450_p8 }
  0xc8   : > { %p3452_p3 = pmov %p3450_p8 }
  0xc9   : > { %2886 = dma.done.wait (%p3451_p12), [#allocation9], 12288  }
  0xca   : > { %2888 = vsyncadd (%p3452_p3), [#allocation9], 4294955008  ;;  %p3453_p13 = pmov %p3452_p3 }
  0xcb   : > { %p3454_p0 = pmov %p3452_p3 }
  0xcc   : > { %2890 = dma.done.wait (%p3453_p13), [#allocation12], 6144  }
  0xcd   : > { %2892 = vsyncadd (%p3454_p0), [#allocation12], 4294961152  ;;  %v2923_v0 = vmov 0.0   ;;  %v396_v1 = vld [vmem:[#allocation7 + $0x8] sm:$0xff]  ;;  %v399_v2 = vld [vmem:[#allocation7 + $0x20] sm:$0xff]  ;;  %v2924_v54 = vmov 0.0|0.0  }
  0xce   : > { %507 = vmatprep.mubr.f32.mxu0 %v2923_v0  ;;  %v395_v3 = vld [vmem:[#allocation7] sm:$0xff]  ;;  %v2267_v4 = vpack.c.bf16 %v399_v2, %v396_v1  ;;  %v398_v5 = vld [vmem:[#allocation7 + $0x18] sm:$0xff]  ;;  %v405_v7 = vld [vmem:[#allocation7 + $0x50] sm:$0xff]  ;;  %vm2925_vm0 = vmmov 0   ;;  %vm1064_vm1 = vcmask 130048   ;;  %s1889_s13 = sshll.u32 %s2988_s30, 7 }
  0xcf   : > { %v402_v6 = vld [vmem:[#allocation7 + $0x38] sm:$0xff]  ;;  %v2269_v8 = vpack.c.bf16 %v398_v5, %v395_v3  ;;  %v401_v10 = vld [vmem:[#allocation7 + $0x30] sm:$0xff]  ;;  %v404_v11 = vld [vmem:[#allocation7 + $0x48] sm:$0xff]  ;;  %s391_s20 = scalar_lea.vmem [#allocation13], %s1877_s15  ;;  %s3373_s3 = scalar_lea.hbm %s3424_s7, %s1889_s13 }
  0xd0   : > { %v2271_v9 = vpack.c.bf16 %v405_v7, %v402_v6  ;;  %v408_v12 = vld [vmem:[#allocation7 + $0x68] sm:$0xff]  ;;  %2268 = vmatprep.subr.bf16.mxu0 %v2267_v4  ;;  %v411_v13 = vld [vmem:[#allocation7 + $0x80] sm:$0xff]  ;;  %v2273_v14 = vpack.c.bf16 %v404_v11, %v401_v10  ;;  %v410_v17 = vld [vmem:[#allocation7 + $0x78] sm:$0xff]  ;;  %s1733_s21 = sshll.u32 %s391_s20, 4  ;;  %s1720_s2 = scalar_lea.sflag [#allocation4], %s3242_s23  ;;  %s3375_s21 = int_to_ptr.vmem [resolvable:$true] %s1733_s21 }
  0xd1   : > { %2270 = vmatpush1.bf16.msra.mxu0 %v2269_v8  ;;  %v2275_v15 = vpack.c.bf16 %v411_v13, %v408_v12  ;;  %v407_v16 = vld [vmem:[#allocation7 + $0x60] sm:$0xff]  ;;  %v414_v18 = vld [vmem:[#allocation7 + $0x98] sm:$0xff]  ;;  %v417_v19 = vld [vmem:[#allocation7 + $0xb0] sm:$0xff]  ;;  %s2829_s10 = scalar_lea.vmem %s3375_s21, 128  ;;  %p3455_p2 = scmp.ne.s32.totalorder %s3441_s16, 0 }
  0xd2   : > { %2272 = vmatprep.subr.bf16.mxu0 %v2271_v9  ;;  %v2277_v20 = vpack.c.bf16 %v410_v17, %v407_v16  ;;  %v2279_v21 = vpack.c.bf16 %v417_v19, %v414_v18  ;;  %v413_v22 = vld [vmem:[#allocation7 + $0x90] sm:$0xff]  ;;  %v416_v23 = vld [vmem:[#allocation7 + $0xa8] sm:$0xff]  ;;  %v423_v25 = vld [vmem:[#allocation7 + $0xe0] sm:$0xff]  ;;  %p2830_p6 = scmp.ne.s32.totalorder %s3375_s21, %s2829_s10  ;;  %s2926_s30 = smov [#allocation13]  }
  0xd3   : > { %v420_v24 = vld [vmem:[#allocation7 + $0xc8] sm:$0xff]  ;;  %v2281_v26 = vpack.c.bf16 %v416_v23, %v413_v22  ;;  %v419_v28 = vld [vmem:[#allocation7 + $0xc0] sm:$0xff]  ;;  %v422_v29 = vld [vmem:[#allocation7 + $0xd8] sm:$0xff]  ;;  %s2833_s15 = sshll.u32 %s2926_s30, 4  ;;  %s2834_s15 = int_to_ptr.vmem [resolvable:$false] %s2833_s15 }
  0xd4   : > { %v2283_v27 = vpack.c.bf16 %v423_v25, %v420_v24  ;;  %v426_v30 = vld [vmem:[#allocation7 + $0xf8] sm:$0xff]  ;;  %v429_v31 = vld [vmem:[#allocation7 + $0x110] sm:$0xff]  ;;  %v2285_v32 = vpack.c.bf16 %v422_v29, %v419_v28  ;;  %v428_v35 = vld [vmem:[#allocation7 + $0x108] sm:$0xff]  ;;  %p2831_p4 = pnand %p2830_p6, %p3455_p2  ;;  %p2836_p5 = scmp.lt.s32.totalorder %s3375_s21, %s2834_s15 }
  0xd5   : > { %2274 = vmatpush1.bf16.msra.mxu0 %v2273_v14  ;;  %v2287_v33 = vpack.c.bf16 %v429_v31, %v426_v30  ;;  %v425_v34 = vld [vmem:[#allocation7 + $0xf0] sm:$0xff]  ;;  %v432_v36 = vld [vmem:[#allocation7 + $0x128] sm:$0xff]  ;;  %v435_v37 = vld [vmem:[#allocation7 + $0x140] sm:$0xff] }
  0xd6   : > { %2276 = vmatprep.subr.bf16.mxu0 %v2275_v15  ;;  %v2289_v38 = vpack.c.bf16 %v428_v35, %v425_v34  ;;  %v2291_v39 = vpack.c.bf16 %v435_v37, %v432_v36  ;;  %v431_v40 = vld [vmem:[#allocation7 + $0x120] sm:$0xff]  ;;  %v434_v41 = vld [vmem:[#allocation7 + $0x138] sm:$0xff]  ;;  %v441_v43 = vld [vmem:[#allocation7 + $0x170] sm:$0xff]  ;;  %p2832_p10 = pneg %p2831_p4 }
  0xd7   : > { %v438_v42 = vld [vmem:[#allocation7 + $0x158] sm:$0xff]  ;;  %v2293_v44 = vpack.c.bf16 %v434_v41, %v431_v40  ;;  %v437_v46 = vld [vmem:[#allocation7 + $0x150] sm:$0xff]  ;;  %v440_v47 = vld [vmem:[#allocation7 + $0x168] sm:$0xff] }
  0xd8   : > { %v2295_v45 = vpack.c.bf16 %v441_v43, %v438_v42  ;;  %v3276_v48 = vld [vmem:[%s3256_s28] sm:$0xff]  ;;  %v2297_v49 = vpack.c.bf16 %v440_v47, %v437_v46  ;;  %v400_v51 = vld [vmem:[#allocation7 + $0x28] sm:$0xff]  ;;  %v392_v52 = vld [vmem:[%s3248_s12] sm:$0xff]  ;;  %s2835_s12 = scalar_lea.vmem %s2834_s15, 256 }
  0xd9   : > { %2278 = vmatpush1.bf16.msra.mxu0 %v2277_v20  ;;  %2082 = vmatprep.mubr.f32.mxu1 %v3276_v48  ;;  %v397_v50 = vld [vmem:[#allocation7 + $0x10] sm:$0xff]  ;;  %v403_v55 = vld [vmem:[#allocation7 + $0x40] sm:$0xff]  ;;  %v406_v56 = vld [vmem:[#allocation7 + $0x58] sm:$0xff]  ;;  %p2837_p7 = scmp.lt.s32.totalorder %s2835_s12, %s2829_s10 }
  0xda   : > { %2280 = vmatprep.subr.bf16.mxu0 %v2279_v21  ;;  %v2300_v53 = vpack.c.bf16 %v400_v51, %v397_v50  ;;  %v2303_v57 = vpack.c.bf16 %v406_v56, %v403_v55  ;;  %v409_v58 = vld [vmem:[#allocation7 + $0x70] sm:$0xff]  ;;  %v412_v59 = vld [vmem:[#allocation7 + $0x88] sm:$0xff]  ;;  %v415_v61 = vld [vmem:[#allocation7 + $0xa0] sm:$0xff] }
  0xdb   : > { %v2306_v60 = vpack.c.bf16 %v412_v59, %v409_v58  ;;  %v418_v62 = vld [vmem:[#allocation7 + $0xb8] sm:$0xff]  ;;  %v421_v1 = vld [vmem:[#allocation7 + $0xd0] sm:$0xff]  ;;  %v424_v2 = vld [vmem:[#allocation7 + $0xe8] sm:$0xff]  ;;  %p2838_p9 = por %p2837_p7, %p2836_p5 }
  0xdc   : > { %v2309_v63 = vpack.c.bf16 %v418_v62, %v415_v61  ;;  %v2312_v3 = vpack.c.bf16 %v424_v2, %v421_v1  ;;  %v427_v4 = vld [vmem:[#allocation7 + $0x100] sm:$0xff]  ;;  %v430_v5 = vld [vmem:[#allocation7 + $0x118] sm:$0xff]  ;;  %v433_v7 = vld [vmem:[#allocation7 + $0x130] sm:$0xff] }
  0xdd   : > { %2282 = vmatpush1.bf16.msra.mxu0 %v2281_v26  ;;  %v2315_v6 = vpack.c.bf16 %v430_v5, %v427_v4  ;;  %v436_v8 = vld [vmem:[#allocation7 + $0x148] sm:$0xff]  ;;  %v439_v10 = vld [vmem:[#allocation7 + $0x160] sm:$0xff]  ;;  %v442_v11 = vld [vmem:[#allocation7 + $0x178] sm:$0xff]  ;;  %p2839_p1 = pnand %p2838_p9, %p2832_p10 }
  0xde   : > { %2284 = vmatprep.subr.bf16.mxu0 %v2283_v27  ;;  %v2318_v9 = vpack.c.bf16 %v436_v8, %v433_v7  ;;  %v585_v12 = vld [vmem:[#allocation8 + $0x8] sm:$0xff]  ;;  %v588_v13 = vld [vmem:[#allocation8 + $0x20] sm:$0xff]  ;;  %v2321_v14 = vpack.c.bf16 %v442_v11, %v439_v10  ;;  %v587_v17 = vld [vmem:[#allocation8 + $0x18] sm:$0xff] }
  0xdf   : > { %v2323_v15 = vpack.c.bf16 %v588_v13, %v585_v12  ;;  %v584_v16 = vld [vmem:[#allocation8] sm:$0xff]  ;;  %v591_v18 = vld [vmem:[#allocation8 + $0x38] sm:$0xff]  ;;  %v594_v19 = vld [vmem:[#allocation8 + $0x50] sm:$0xff] }
  0xe0   : > { %v2325_v20 = vpack.c.bf16 %v587_v17, %v584_v16  ;;  %v2327_v21 = vpack.c.bf16 %v594_v19, %v591_v18  ;;  %v590_v22 = vld [vmem:[#allocation8 + $0x30] sm:$0xff]  ;;  %v593_v23 = vld [vmem:[#allocation8 + $0x48] sm:$0xff]  ;;  %v600_v25 = vld [vmem:[#allocation8 + $0x80] sm:$0xff] }
  0xe1   : > { %2286 = vmatpush1.bf16.msra.mxu0 %v2285_v32  ;;  %v597_v24 = vld [vmem:[#allocation8 + $0x68] sm:$0xff]  ;;  %v2329_v26 = vpack.c.bf16 %v593_v23, %v590_v22  ;;  %v596_v28 = vld [vmem:[#allocation8 + $0x60] sm:$0xff]  ;;  %v599_v29 = vld [vmem:[#allocation8 + $0x78] sm:$0xff] }
  0xe2   : > { %2288 = vmatprep.subr.bf16.mxu0 %v2287_v33  ;;  %v2331_v27 = vpack.c.bf16 %v600_v25, %v597_v24  ;;  %v603_v30 = vld [vmem:[#allocation8 + $0x98] sm:$0xff]  ;;  %v606_v31 = vld [vmem:[#allocation8 + $0xb0] sm:$0xff]  ;;  %v2333_v32 = vpack.c.bf16 %v599_v29, %v596_v28  ;;  %v605_v35 = vld [vmem:[#allocation8 + $0xa8] sm:$0xff] }
  0xe3   : > { %v2335_v33 = vpack.c.bf16 %v606_v31, %v603_v30  ;;  %v602_v34 = vld [vmem:[#allocation8 + $0x90] sm:$0xff]  ;;  %v609_v36 = vld [vmem:[#allocation8 + $0xc8] sm:$0xff]  ;;  %v612_v37 = vld [vmem:[#allocation8 + $0xe0] sm:$0xff] }
  0xe4   : > { %v608_v40 = vld [vmem:[#allocation8 + $0xc0] sm:$0xff]  ;;  %v611_v41 = vld [vmem:[#allocation8 + $0xd8] sm:$0xff]  ;;  %v618_v43 = vld [vmem:[#allocation8 + $0x110] sm:$0xff] }
  0xe5   : > { %2290 = vmatpush1.bf16.msra.mxu0 %v2289_v38  ;;  %v2337_v38 = vpack.c.bf16 %v605_v35, %v602_v34  ;;  %v615_v42 = vld [vmem:[#allocation8 + $0xf8] sm:$0xff]  ;;  %v614_v46 = vld [vmem:[#allocation8 + $0xf0] sm:$0xff]  ;;  %v617_v47 = vld [vmem:[#allocation8 + $0x108] sm:$0xff] }
  0xe6   : > { %2292 = vmatprep.subr.bf16.mxu0 %v2291_v39  ;;  %v2339_v39 = vpack.c.bf16 %v612_v37, %v609_v36  ;;  %v624_v50 = vld [vmem:[#allocation8 + $0x140] sm:$0xff]  ;;  %v2345_v51 = vpack.c.bf16 %v617_v47, %v614_v46  ;;  %v623_v55 = vld [vmem:[#allocation8 + $0x138] sm:$0xff]  ;;  %v629_v61 = vld [vmem:[#allocation8 + $0x168] sm:$0xff] }
  0xe7   : > { %v627_v56 = vld [vmem:[#allocation8 + $0x158] sm:$0xff]  ;;  %v785_v1 = vld [vmem:[#allocation10 + $0x8] sm:$0xff]  ;;  %v788_v2 = vld [vmem:[#allocation10 + $0x20] sm:$0xff] }
  0xe8   : > { %v784_v4 = vld [vmem:[#allocation10] sm:$0xff]  ;;  %v787_v5 = vld [vmem:[#allocation10 + $0x18] sm:$0xff]  ;;  %v794_v8 = vld [vmem:[#allocation10 + $0x50] sm:$0xff] }
  0xe9   : > { %2294 = vmatpush1.bf16.msra.mxu0 %v2293_v44  ;;  %v2341_v44 = vpack.c.bf16 %v611_v41, %v608_v40  ;;  %v791_v7 = vld [vmem:[#allocation10 + $0x38] sm:$0xff]  ;;  %v793_v11 = vld [vmem:[#allocation10 + $0x48] sm:$0xff]  ;;  %v800_v13 = vld [vmem:[#allocation10 + $0x80] sm:$0xff] }
  0xea   : > { %2296 = vmatprep.subr.bf16.mxu0 %v2295_v45  ;;  %v2343_v45 = vpack.c.bf16 %v618_v43, %v615_v42  ;;  %v2391_v10 = vpack.c.bf16 %v794_v8, %v791_v7  ;;  %v797_v12 = vld [vmem:[#allocation10 + $0x68] sm:$0xff]  ;;  %v796_v16 = vld [vmem:[#allocation10 + $0x60] sm:$0xff]  ;;  %v799_v17 = vld [vmem:[#allocation10 + $0x78] sm:$0xff] }
  0xeb   : > { %v803_v18 = vld [vmem:[#allocation10 + $0x98] sm:$0xff]  ;;  %v806_v19 = vld [vmem:[#allocation10 + $0xb0] sm:$0xff]  ;;  %v805_v23 = vld [vmem:[#allocation10 + $0xa8] sm:$0xff] }
  0xec   : > { %v802_v22 = vld [vmem:[#allocation10 + $0x90] sm:$0xff]  ;;  %v809_v24 = vld [vmem:[#allocation10 + $0xc8] sm:$0xff]  ;;  %v812_v25 = vld [vmem:[#allocation10 + $0xe0] sm:$0xff] }
  0xed   : > { %2298 = vmatpush1.bf16.msra.mxu0 %v2297_v49  ;;  %v621_v49 = vld [vmem:[#allocation8 + $0x128] sm:$0xff]  ;;  %v808_v28 = vld [vmem:[#allocation10 + $0xc0] sm:$0xff]  ;;  %v811_v29 = vld [vmem:[#allocation10 + $0xd8] sm:$0xff] }
  0xee   : > { %2299 = vmatprep.subr.bf16.mxu0 %v2924_v54  ;;  %v815_v30 = vld [vmem:[#allocation10 + $0xf8] sm:$0xff]  ;;  %v818_v31 = vld [vmem:[#allocation10 + $0x110] sm:$0xff]  ;;  %v817_v35 = vld [vmem:[#allocation10 + $0x108] sm:$0xff] }
  0xef   : > { %v814_v34 = vld [vmem:[#allocation10 + $0xf0] sm:$0xff]  ;;  %v821_v36 = vld [vmem:[#allocation10 + $0x128] sm:$0xff]  ;;  %v824_v37 = vld [vmem:[#allocation10 + $0x140] sm:$0xff] }
  0xf0   : > { %508 = vmatmul.mubr.f32.vlgmr.msra.gmra.mrb[0].mxu0 %v392_v52  ;;  %v820_v40 = vld [vmem:[#allocation10 + $0x120] sm:$0xff]  ;;  %v823_v41 = vld [vmem:[#allocation10 + $0x138] sm:$0xff]  ;;  %v830_v43 = vld [vmem:[#allocation10 + $0x170] sm:$0xff] }
  0xf1   : > { %2301 = vmatpush3.bf16.msra.mxu0 %v2300_v53  ;;  %2047 = vmatprep.mubr.msk.f32.mxu0 %vm2925_vm0, %v2923_v0  ;;  %v620_v53 = vld [vmem:[#allocation8 + $0x120] sm:$0xff]  ;;  %v827_v42 = vld [vmem:[#allocation10 + $0x158] sm:$0xff]  ;;  %v826_v46 = vld [vmem:[#allocation10 + $0x150] sm:$0xff] }
  0xf2   : > { %2302 = vmatprep.subr.bf16.mxu0 %v2924_v54  ;;  %v2349_v58 = vpack.c.bf16 %v623_v55, %v620_v53  ;;  %v829_v47 = vld [vmem:[#allocation10 + $0x168] sm:$0xff]  ;;  %v595_v55 = vld [vmem:[#allocation8 + $0x58] sm:$0xff]  ;;  %v622_v7 = vld [vmem:[#allocation8 + $0x130] sm:$0xff] }
  0xf3   : > { %v625_v8 = vld [vmem:[#allocation8 + $0x148] sm:$0xff] }
  0xf5   : > { %2304 = vmatpush3.bf16.msra.mxu0 %v2303_v57  ;;  %v630_v57 = vld [vmem:[#allocation8 + $0x170] sm:$0xff] }
  0xf6   : > { %2305 = vmatprep.subr.bf16.mxu0 %v2924_v54  ;;  %v2351_v59 = vpack.c.bf16 %v630_v57, %v627_v56  ;;  %v598_v57 = vld [vmem:[#allocation8 + $0x70] sm:$0xff] }
  0xf9   : > { %2307 = vmatpush3.bf16.msra.mxu0 %v2306_v60  ;;  %v626_v60 = vld [vmem:[#allocation8 + $0x150] sm:$0xff] }
  0xfa   : > { %2308 = vmatprep.subr.bf16.mxu0 %v2924_v54  ;;  %v2353_v62 = vpack.c.bf16 %v629_v61, %v626_v60  ;;  %v604_v60 = vld [vmem:[#allocation8 + $0xa0] sm:$0xff]  ;;  %v607_v61 = vld [vmem:[#allocation8 + $0xb8] sm:$0xff] }
  0xfd   : > { %2310 = vmatpush3.bf16.msra.mxu0 %v2309_v63  ;;  %v3294_v63 = vld [vmem:[%s3256_s28 + $0x8] sm:$0xff] }
  0xfe   : > { %2311 = vmatprep.subr.bf16.mxu0 %v2924_v54 }
 0x101   : > { %2313 = vmatpush3.bf16.msra.mxu0 %v2312_v3  ;;  %v2387_v3 = vpack.c.bf16 %v788_v2, %v785_v1  ;;  %v610_v1 = vld [vmem:[#allocation8 + $0xd0] sm:$0xff]  ;;  %v613_v2 = vld [vmem:[#allocation8 + $0xe8] sm:$0xff] }
 0x102   : > { %2314 = vmatprep.subr.bf16.mxu0 %v2924_v54 }
 0x105   : > { %2316 = vmatpush3.bf16.msra.mxu0 %v2315_v6  ;;  %v2389_v6 = vpack.c.bf16 %v787_v5, %v784_v4  ;;  %v616_v4 = vld [vmem:[#allocation8 + $0x100] sm:$0xff]  ;;  %v619_v5 = vld [vmem:[#allocation8 + $0x118] sm:$0xff] }
 0x106   : > { %2317 = vmatprep.subr.bf16.mxu0 %v2924_v54 }
 0x109   : > { %2319 = vmatpush3.bf16.msra.mxu0 %v2318_v9  ;;  %v790_v9 = vld [vmem:[#allocation10 + $0x30] sm:$0xff] }
 0x10a   : > { %2320 = vmatprep.subr.bf16.mxu0 %v2924_v54 }
 0x10d   : > { %2322 = vmatpush3.bf16.msra.mxu0 %v2321_v14  ;;  %v2393_v14 = vpack.c.bf16 %v793_v11, %v790_v9  ;;  %v2379_v9 = vpack.c.bf16 %v625_v8, %v622_v7  ;;  %v631_v11 = vld [vmem:[#allocation8 + $0x178] sm:$0xff] }
 0x10e   : > { %2324 = vmatprep.subr.bf16.mxu0 %v2323_v15  ;;  %v2395_v15 = vpack.c.bf16 %v800_v13, %v797_v12  ;;  %v786_v13 = vld [vmem:[#allocation10 + $0x10] sm:$0xff] }
 0x110   : > { %2048 = vmatmul.mubr.f32.vlgmr.msra.gmra.mrb[2].mxu0 %v392_v52  ;;  %v2347_v52 = vpack.c.bf16 %v624_v50, %v621_v49  ;;  %v2417_v49 = vpack.c.bf16 %v829_v47, %v826_v46  ;;  %v586_v50 = vld [vmem:[#allocation8 + $0x10] sm:$0xff] }
 0x111   : > { %2326 = vmatpush1.bf16.msra.mxu0 %v2325_v20  ;;  %696 = vmatprep.mubr.f32.mxu0 %v2923_v0  ;;  %v2397_v20 = vpack.c.bf16 %v799_v17, %v796_v16  ;;  %v792_v16 = vld [vmem:[#allocation10 + $0x40] sm:$0xff]  ;;  %v795_v17 = vld [vmem:[#allocation10 + $0x58] sm:$0xff] }
 0x112   : > { %2328 = vmatprep.subr.bf16.mxu0 %v2327_v21  ;;  %v2399_v21 = vpack.c.bf16 %v806_v19, %v803_v18  ;;  %v2423_v18 = vpack.c.bf16 %v795_v17, %v792_v16  ;;  %v798_v19 = vld [vmem:[#allocation10 + $0x70] sm:$0xff]  ;;  %v1149_v16 = vld [vmem:[#allocation11] sm:$0xff]  ;;  %v1150_v17 = vld [vmem:[#allocation11 + $0x8] sm:$0xff] }
 0x115   : > { %2330 = vmatpush1.bf16.msra.mxu0 %v2329_v26  ;;  %v2401_v26 = vpack.c.bf16 %v805_v23, %v802_v22  ;;  %v804_v22 = vld [vmem:[#allocation10 + $0xa0] sm:$0xff]  ;;  %v807_v23 = vld [vmem:[#allocation10 + $0xb8] sm:$0xff] }
 0x116   : > { %2332 = vmatprep.subr.bf16.mxu0 %v2331_v27  ;;  %v2403_v27 = vpack.c.bf16 %v812_v25, %v809_v24  ;;  %v2431_v24 = vpack.c.bf16 %v807_v23, %v804_v22  ;;  %v1152_v22 = vld [vmem:[#allocation11 + $0x18] sm:$0xff] }
 0x119   : > { %2334 = vmatpush1.bf16.msra.mxu0 %v2333_v32  ;;  %v2405_v32 = vpack.c.bf16 %v811_v29, %v808_v28 }
 0x11a   : > { %2336 = vmatprep.subr.bf16.mxu0 %v2335_v33  ;;  %v2407_v33 = vpack.c.bf16 %v818_v31, %v815_v30  ;;  %v816_v30 = vld [vmem:[#allocation10 + $0x100] sm:$0xff]  ;;  %v819_v31 = vld [vmem:[#allocation10 + $0x118] sm:$0xff] }
 0x11d   : > { %2338 = vmatpush1.bf16.msra.mxu0 %v2337_v38  ;;  %v2409_v38 = vpack.c.bf16 %v817_v35, %v814_v34  ;;  %v828_v35 = vld [vmem:[#allocation10 + $0x160] sm:$0xff] }
 0x11e   : > { %2340 = vmatprep.subr.bf16.mxu0 %v2339_v39  ;;  %v2411_v39 = vpack.c.bf16 %v824_v37, %v821_v36  ;;  %v831_v36 = vld [vmem:[#allocation10 + $0x178] sm:$0xff] }
 0x11f   : > { %v2447_v37 = vpack.c.bf16 %v831_v36, %v828_v35  ;;  %v1161_v36 = vld [vmem:[#allocation11 + $0x60] sm:$0xff] }
 0x121   : > { %2342 = vmatpush1.bf16.msra.mxu0 %v2341_v44  ;;  %v2413_v44 = vpack.c.bf16 %v823_v41, %v820_v40 }
 0x122   : > { %2344 = vmatprep.subr.bf16.mxu0 %v2343_v45  ;;  %v2415_v45 = vpack.c.bf16 %v830_v43, %v827_v42 }
 0x125   : > { %2346 = vmatpush1.bf16.msra.mxu0 %v2345_v51  ;;  %v589_v51 = vld [vmem:[#allocation8 + $0x28] sm:$0xff] }
 0x126   : > { %2348 = vmatprep.subr.bf16.mxu0 %v2347_v52  ;;  %v592_v52 = vld [vmem:[#allocation8 + $0x40] sm:$0xff]  ;;  %v2355_v53 = vpack.c.bf16 %v589_v51, %v586_v50 }
 0x127   : > { %v2359_v56 = vpack.c.bf16 %v595_v55, %v592_v52 }
 0x128   : > { %2356 = vmatprep.subr.bf16.mxu1 %v2355_v53 }
 0x129   : > { %2350 = vmatpush1.bf16.msra.mxu0 %v2349_v58  ;;  %v601_v58 = vld [vmem:[#allocation8 + $0x88] sm:$0xff]  ;;  %2358 = vmatpush3.bf16.msra.mxu1 %v2355_v53 }
 0x12a   : > { %2352 = vmatprep.subr.bf16.mxu0 %v2351_v59  ;;  %2360 = vmatprep.subr.bf16.mxu1 %v2359_v56  ;;  %v2363_v59 = vpack.c.bf16 %v601_v58, %v598_v57 }
 0x12d   : > { %2354 = vmatpush1.bf16.msra.mxu0 %v2353_v62  ;;  %2362 = vmatpush3.bf16.msra.mxu1 %v2359_v56  ;;  %v2367_v62 = vpack.c.bf16 %v607_v61, %v604_v60 }
 0x12e   : > { %2388 = vmatprep.subr.bf16.mxu0 %v2387_v3  ;;  %2364 = vmatprep.subr.bf16.mxu1 %v2363_v59  ;;  %v2371_v3 = vpack.c.bf16 %v613_v2, %v610_v1 }
 0x130   : > { %697 = vmatmul.mubr.f32.vlgmr.msra.gmra.mrb[4].mxu0 %v3276_v48 }
 0x131   : > { %702 = vmatprep.mubr.f32.mxu0 %v2923_v0  ;;  %2390 = vmatpush1.bf16.msra.mxu0 %v2389_v6  ;;  %v2375_v6 = vpack.c.bf16 %v619_v5, %v616_v4 }
 0x132   : > { %2392 = vmatprep.subr.bf16.mxu0 %v2391_v10  ;;  %2366 = vmatpush3.bf16.msra.mxu1 %v2363_v59  ;;  %v628_v10 = vld [vmem:[#allocation8 + $0x160] sm:$0xff] }
 0x133   : > { %2368 = vmatprep.subr.bf16.mxu1 %v2367_v62  ;;  %v2383_v12 = vpack.c.bf16 %v631_v11, %v628_v10 }
 0x134   : > { %703 = vmatmul.mubr.f32.gmra.mrb[6].mxu0 %v3294_v63 }
 0x135   : > { %896 = vmatprep.mubr.f32.mxu0 %v2923_v0  ;;  %2394 = vmatpush1.bf16.msra.mxu0 %v2393_v14  ;;  %v789_v14 = vld [vmem:[#allocation10 + $0x28] sm:$0xff] }
 0x136   : > { %2396 = vmatprep.subr.bf16.mxu0 %v2395_v15  ;;  %2370 = vmatpush3.bf16.msra.mxu1 %v2367_v62  ;;  %v2419_v15 = vpack.c.bf16 %v789_v14, %v786_v13 }
 0x137   : > { %2372 = vmatprep.subr.bf16.mxu1 %v2371_v3 }
 0x139   : > { %2398 = vmatpush1.bf16.msra.mxu0 %v2397_v20  ;;  %v801_v20 = vld [vmem:[#allocation10 + $0x88] sm:$0xff] }
 0x13a   : > { %2400 = vmatprep.subr.bf16.mxu0 %v2399_v21  ;;  %2374 = vmatpush3.bf16.msra.mxu1 %v2371_v3  ;;  %v2427_v21 = vpack.c.bf16 %v801_v20, %v798_v19  ;;  %v2458_v19 = vpack.c.bf16 %v1150_v17, %v1149_v16 }
 0x13b   : > { %2376 = vmatprep.subr.bf16.mxu1 %v2375_v6 }
 0x13d   : > { %2402 = vmatpush1.bf16.msra.mxu0 %v2401_v26  ;;  %v810_v26 = vld [vmem:[#allocation10 + $0xd0] sm:$0xff] }
 0x13e   : > { %2404 = vmatprep.subr.bf16.mxu0 %v2403_v27  ;;  %2378 = vmatpush3.bf16.msra.mxu1 %v2375_v6  ;;  %v813_v27 = vld [vmem:[#allocation10 + $0xe8] sm:$0xff] }
 0x13f   : > { %2380 = vmatprep.subr.bf16.mxu1 %v2379_v9  ;;  %v2435_v29 = vpack.c.bf16 %v813_v27, %v810_v26  ;;  %v1154_v26 = vld [vmem:[#allocation11 + $0x28] sm:$0xff] }
 0x141   : > { %2406 = vmatpush1.bf16.msra.mxu0 %v2405_v32  ;;  %v2439_v32 = vpack.c.bf16 %v819_v31, %v816_v30  ;;  %v1157_v31 = vld [vmem:[#allocation11 + $0x40] sm:$0xff] }
 0x142   : > { %2408 = vmatprep.subr.bf16.mxu0 %v2407_v33  ;;  %2382 = vmatpush3.bf16.msra.mxu1 %v2379_v9  ;;  %v825_v33 = vld [vmem:[#allocation10 + $0x148] sm:$0xff] }
 0x143   : > { %2384 = vmatprep.subr.bf16.mxu1 %v2383_v12 }
 0x145   : > { %2410 = vmatpush1.bf16.msra.mxu0 %v2409_v38 }
 0x146   : > { %2412 = vmatprep.subr.bf16.mxu0 %v2411_v39  ;;  %2386 = vmatpush3.bf16.msra.mxu1 %v2383_v12 }
 0x147   : > { %2420 = vmatprep.subr.bf16.mxu1 %v2419_v15 }
 0x149   : > { %2414 = vmatpush1.bf16.msra.mxu0 %v2413_v44  ;;  %2083 = vmatmul.mubr.f32.vlgmr.msra.gmra.mrb[0].mxu1 %v3294_v63 }
 0x14a   : > { %2416 = vmatprep.subr.bf16.mxu0 %v2415_v45  ;;  %2422 = vmatpush3.bf16.msra.mxu1 %v2419_v15 }
 0x14b   : > { %2117 = vmatprep.mubr.f32.mxu1 %v3276_v48  ;;  %2424 = vmatprep.subr.bf16.mxu1 %v2423_v18 }
 0x14d   : > { %2418 = vmatpush1.bf16.msra.mxu0 %v2417_v49 }
 0x14e   : > { %2451 = vmatprep.subr.bf16.mxu0 %v2924_v54  ;;  %2426 = vmatpush3.bf16.msra.mxu1 %v2423_v18 }
 0x14f   : > { %2428 = vmatprep.subr.bf16.mxu1 %v2427_v21 }
 0x150   : > { %897 = vmatmul.mubr.f32.vlgmr.msra.gmra.mrb[8].mxu0 %v3276_v48  ;;  %v822_v48 = vld [vmem:[#allocation10 + $0x130] sm:$0xff] }
 0x151   : > { %902 = vmatprep.mubr.f32.mxu0 %v2923_v0  ;;  %v2443_v34 = vpack.c.bf16 %v825_v33, %v822_v48  ;;  %v1159_v33 = vld [vmem:[#allocation11 + $0x50] sm:$0xff] }
 0x152   : > { %2430 = vmatpush3.bf16.msra.mxu1 %v2427_v21  ;;  %v1151_v21 = vld [vmem:[#allocation11 + $0x10] sm:$0xff] }
 0x153   : > { %2432 = vmatprep.subr.bf16.mxu1 %v2431_v24  ;;  %v2461_v23 = vpack.c.bf16 %v1152_v22, %v1151_v21  ;;  %v1632_v21 = vld [vmem:[#allocation11 + $0x108] sm:$0xff]  ;;  %v1633_v22 = vld [vmem:[#allocation11 + $0x110] sm:$0xff] }
 0x154   : > { %903 = vmatmul.mubr.f32.gmra.mrb[10].mxu0 %v3294_v63 }
 0x155   : > { %2124 = vmatprep.mubr.msk.f32.mxu0 %vm2925_vm0, %v2923_v0 }
 0x156   : > { %2434 = vmatpush3.bf16.msra.mxu1 %v2431_v24 }
 0x157   : > { %2436 = vmatprep.subr.bf16.mxu1 %v2435_v29 }
 0x15a   : > { %2438 = vmatpush3.bf16.msra.mxu1 %v2435_v29  ;;  %v1156_v29 = vld [vmem:[#allocation11 + $0x38] sm:$0xff] }
 0x15b   : > { %2440 = vmatprep.subr.bf16.mxu1 %v2439_v32 }
 0x15e   : > { %2442 = vmatpush3.bf16.msra.mxu1 %v2439_v32  ;;  %v1158_v32 = vld [vmem:[#allocation11 + $0x48] sm:$0xff] }
 0x15f   : > { %2444 = vmatprep.subr.bf16.mxu1 %v2443_v34  ;;  %v2470_v48 = vpack.c.bf16 %v1158_v32, %v1157_v31  ;;  %v1639_v31 = vld [vmem:[#allocation11 + $0x140] sm:$0xff]  ;;  %v1640_v32 = vld [vmem:[#allocation11 + $0x148] sm:$0xff] }
 0x162   : > { %2446 = vmatpush3.bf16.msra.mxu1 %v2443_v34  ;;  %v1160_v34 = vld [vmem:[#allocation11 + $0x58] sm:$0xff] }
 0x163   : > { %2448 = vmatprep.subr.bf16.mxu1 %v2447_v37  ;;  %v2473_v35 = vpack.c.bf16 %v1160_v34, %v1159_v33  ;;  %v1641_v33 = vld [vmem:[#allocation11 + $0x150] sm:$0xff]  ;;  %v1642_v34 = vld [vmem:[#allocation11 + $0x158] sm:$0xff] }
 0x166   : > { %2450 = vmatpush3.bf16.msra.mxu1 %v2447_v37  ;;  %v1162_v37 = vld [vmem:[#allocation11 + $0x68] sm:$0xff] }
 0x167   : > { %2454 = vmatprep.subr.bf16.mxu1 %v2924_v54 }
 0x169   : > { %2118 = vmatmul.mubr.f32.vlgmr.msra.gmra.mrb[2].mxu1 %v3294_v63 }
 0x16a   : > { %2131 = vmatprep.mubr.msk.f32.mxu1 %vm2925_vm0, %v2923_v0 }
 0x1c3   : > { %v509_v25 = vpop.f32.mrb[0].mxu0 }
 0x1c4   : > { %v511_v28 = vpop.f32.mrb[1].mxu0  ;;  %v984_v46 = vmul.f32 0.125, %v509_v25  ;;  %v1153_v25 = vld [vmem:[#allocation11 + $0x20] sm:$0xff] }
 0x1c5   : > { %v985_v63 = vmul.f32 0.125, %v511_v28  ;;  %v2464_v27 = vpack.c.bf16 %v1154_v26, %v1153_v25  ;;  %v1155_v28 = vld [vmem:[#allocation11 + $0x30] sm:$0xff]  ;;  %v1635_v26 = vld [vmem:[#allocation11 + $0x120] sm:$0xff] }
 0x1c6   : > { %v2467_v30 = vpack.c.bf16 %v1156_v29, %v1155_v28  ;;  %v1637_v28 = vld [vmem:[#allocation11 + $0x130] sm:$0xff]  ;;  %v1638_v29 = vld [vmem:[#allocation11 + $0x138] sm:$0xff] }
 0x1e3   : > { %v3310_v38 = vpop.f32.mrb[2].mxu0 }
 0x1e4   : > { %v2049_v39 = vpop.f32.mrb[3].mxu0  ;;  %v986_v24 = vmul.f32 0.125, %v3310_v38  ;;  %v2476_v38 = vpack.c.bf16 %v1162_v37, %v1161_v36  ;;  %v1643_v36 = vld [vmem:[#allocation11 + $0x160] sm:$0xff]  ;;  %v1644_v37 = vld [vmem:[#allocation11 + $0x168] sm:$0xff] }
 0x1e5   : > { %v1163_v39 = vld [vmem:[#allocation11 + $0x70] sm:$0xff] }
 0x203   : > { %v698_v40 = vpop.f32.mrb[4].mxu0 }
 0x204   : > { %v700_v41 = vpop.f32.mrb[5].mxu0 }
 0x207   : > { %v704_v42 = vpop.f32.mrb[6].mxu0 }
 0x208   : > { %v2452_v43 = vpack.c.bf16 %v704_v42, %v698_v40  ;;  %v706_v44 = vpop.f32.mrb[7].mxu0  ;;  %v1164_v40 = vld [vmem:[#allocation11 + $0x78] sm:$0xff] }
 0x209   : > { %v2482_v45 = vpack.c.bf16 %v706_v44, %v700_v41  ;;  %v2479_v41 = vpack.c.bf16 %v1164_v40, %v1163_v39  ;;  %v1645_v39 = vld [vmem:[#allocation11 + $0x170] sm:$0xff]  ;;  %v1646_v40 = vld [vmem:[#allocation11 + $0x178] sm:$0xff] }
 0x20a   : > { %2453 = vmatpush3.bf16.xpose.msra.mxu0 %v2452_v43 }
 0x20b   : > { %2481 = vmatprep.subr.bf16.mxu0 %v2924_v54 }
 0x211   : > { %2125 = vmatmul.mubr.f32.vlgmr.msra.gmra.mrb[12].mxu0 %v984_v46  ;;  %v1391_v46 = vld [vmem:[#allocation11 + $0x88] sm:$0xff] }
 0x212   : > { %2483 = vmatpush3.bf16.xpose.msra.mxu0 %v2482_v45  ;;  %2173 = vmatprep.mubr.msk.f32.mxu0 %vm2925_vm0, %v2923_v0  ;;  %v1390_v45 = vld [vmem:[#allocation11 + $0x80] sm:$0xff] }
 0x213   : > { %2484 = vmatprep.subr.bf16.mxu0 %v2924_v54 }
 0x219   : > { %2174 = vmatmul.mubr.f32.vlgmr.msra.gmra.mrb[14].mxu0 %v985_v63 }
 0x21a   : > { %2180 = vmatprep.mubr.msk.f32.mxu0 %vm2925_vm0, %v2923_v0 }
 0x21c   : > { %v2084_v9 = vpop.f32.mrb[0].mxu1 }
 0x21d   : > { %v775_v10 = vpop.f32.mrb[1].mxu1 }
 0x21e   : > { %v2512_v11 = vpack.c.bf16 %v2084_v9, %v775_v10  ;;  %v1402_v9 = vld [vmem:[#allocation11 + $0xe0] sm:$0xff]  ;;  %v1403_v10 = vld [vmem:[#allocation11 + $0xe8] sm:$0xff] }
 0x223   : > { %v898_v47 = vpop.f32.mrb[8].mxu0 }
 0x224   : > { %v900_v49 = vpop.f32.mrb[9].mxu0 }
 0x227   : > { %v904_v50 = vpop.f32.mrb[10].mxu0 }
 0x228   : > { %v2455_v51 = vpack.c.bf16 %v904_v50, %v898_v47  ;;  %v906_v52 = vpop.f32.mrb[11].mxu0  ;;  %v1392_v50 = vld [vmem:[#allocation11 + $0x90] sm:$0xff] }
 0x229   : > { %v2485_v53 = vpack.c.bf16 %v906_v52, %v900_v49  ;;  %v2488_v49 = vpack.c.bf16 %v1391_v46, %v1390_v45 }
 0x22a   : > { %2456 = vmatpush3.bf16.msra.mxu1 %v2455_v51  ;;  %v1393_v51 = vld [vmem:[#allocation11 + $0x98] sm:$0xff] }
 0x22b   : > { %2486 = vmatpush3.bf16.msra.mxu0 %v2485_v53  ;;  %2457 = vmatprep.subr.bf16.mxu1 %v2924_v54 }
 0x22c   : > { %2511 = vmatprep.subr.bf16.mxu0 %v2924_v54 }
 0x23c   : > { %v2119_v42 = vpop.f32.mrb[2].mxu1 }
 0x23d   : > { %v975_v43 = vpop.f32.mrb[3].mxu1 }
 0x23e   : > { %v2515_v44 = vpack.c.bf16 %v2119_v42, %v975_v43 }
 0x2e4   : > { %v1060_v55 = vpop.f32.mrb[12].mxu0 }
 0x2e5   : > { %v2126_v56 = vpop.f32.mrb[13].mxu0  ;;  %v1065_v57 = vsel %vm1064_vm1, %v1060_v55, -inf }
 0x2e6   : > { %1066 = vmax.xlane.f32.xlu1 %v1065_v57  ;;  %v1394_v56 = vld [vmem:[#allocation11 + $0xa0] sm:$0xff]  ;;  %v1395_v57 = vld [vmem:[#allocation11 + $0xa8] sm:$0xff] }
 0x2ec   : > { %v1302_v58 = vpop.f32.mrb[14].mxu0 }
 0x2ed   : > { %v2175_v59 = vpop.f32.mrb[15].mxu0  ;;  %v1306_v60 = vsel %vm1064_vm1, %v1302_v58, -inf }
 0x2ee   : > { %1307 = vmax.xlane.f32.xlu0 %v1306_v60 }
 0x373   : > { %v1067_v61 = vpop.xlane.xlu1 %1066 }
 0x374   : > { %v1068_v62 = vsub.f32 %v1060_v55, %v1067_v61  ;;  %v2491_v55 = vpack.c.bf16 %v1393_v51, %v1392_v50  ;;  %v2494_v61 = vpack.c.bf16 %v1395_v57, %v1394_v56 }
 0x376   : > { %v1069_v3 = vmul.f32 1.442695, %v1068_v62  ;;  %v1396_v62 = vld [vmem:[#allocation11 + $0xb0] sm:$0xff] }
 0x37b   : > { %v1308_v1 = vpop.xlane.xlu0 %1307 }
 0x37c   : > { %v1309_v2 = vsub.f32 %v1302_v58, %v1308_v1  ;;  %v1397_v1 = vld [vmem:[#allocation11 + $0xb8] sm:$0xff] }
 0x37e   : > { %v1310_v4 = vmul.f32 1.442695, %v1309_v2  ;;  %v2497_v2 = vpack.c.bf16 %v1397_v1, %v1396_v62 }
 0x380   : > { %2645 = vpow2.f32 %v1310_v4  ;;  %v1399_v4 = vld [vmem:[#allocation11 + $0xc8] sm:$0xff] }
 0x381   : > { %2647 = vpow2.f32 %v1069_v3  ;;  %v1398_v3 = vld [vmem:[#allocation11 + $0xc0] sm:$0xff] }
 0x38a   : > { %v2646_v5 = vpop.eup %2645 }
 0x38b   : > { %v1312_v6 = vsel %vm1064_vm1, %v2646_v5, 0.0  ;;  %v2648_v7 = vpop.eup %2647 }
 0x38c   : > { %1313 = vadd.xlane.f32.xlu0 %v1312_v6  ;;  %v1071_v8 = vsel %vm1064_vm1, %v2648_v7, 0.0  ;;  %v1400_v6 = vld [vmem:[#allocation11 + $0xd0] sm:$0xff] }
 0x390   : > { %1072 = vadd.xlane.f32.xlu0 %v1071_v8 }
 0x419   : > { %v1314_v12 = vpop.xlane.xlu0 %1313 }
 0x41a   : > { %2649 = vrcp.f32 %v1314_v12  ;;  %v1404_v12 = vld [vmem:[#allocation11 + $0xf0] sm:$0xff] }
 0x41d   : > { %v1073_v13 = vpop.xlane.xlu0 %1072 }
 0x41e   : > { %2651 = vrcp.f32 %v1073_v13  ;;  %v1405_v13 = vld [vmem:[#allocation11 + $0xf8] sm:$0xff] }
 0x424   : > { %v2650_v14 = vpop.eup %2649 }
 0x425   : > { %v1316_v15 = vmul.f32 %v2650_v14, %v2646_v5  ;;  %v2500_v5 = vpack.c.bf16 %v1399_v4, %v1398_v3  ;;  %v2509_v14 = vpack.c.bf16 %v1405_v13, %v1404_v12 }
 0x427   : > { %2181 = vmatmul.mubr.msk.f32.vlgmr.msra.gmra.mrb[16].mxu0 %vm1064_vm1, %v1316_v15 }
 0x428   : > { %v2652_v18 = vpop.eup %2651  ;;  %2513 = vmatpush3.bf16.xpose.msra.mxu0 %v2512_v11  ;;  %2222 = vmatprep.mubr.msk.f32.mxu0 %vm2925_vm0, %v2923_v0  ;;  %v2506_v11 = vpack.c.bf16 %v1403_v10, %v1402_v9 }
 0x429   : > { %v1075_v20 = vmul.f32 %v2652_v18, %v2648_v7  ;;  %2514 = vmatprep.subr.bf16.mxu0 %v2924_v54  ;;  %v1401_v7 = vld [vmem:[#allocation11 + $0xd8] sm:$0xff] }
 0x42a   : > { %v2503_v8 = vpack.c.bf16 %v1401_v7, %v1400_v6 }
 0x42b   : > { %2132 = vmatmul.mubr.msk.f32.vlgmr.msra.gmra.mrb[4].mxu1 %vm1064_vm1, %v1075_v20  ;;  %v1631_v20 = vld [vmem:[#allocation11 + $0x100] sm:$0xff] }
 0x42c   : > { %2459 = vmatpush3.bf16.msra.mxu1 %v2458_v19  ;;  %2166 = vmatprep.mubr.msk.f32.mxu1 %vm2925_vm0, %v2923_v0 }
 0x42d   : > { %2460 = vmatprep.subr.bf16.mxu1 %v2924_v54 }
 0x42f   : > { %2223 = vmatmul.mubr.f32.vlgmr.msra.gmra.mrb[18].mxu0 %v986_v24  ;;  %v1634_v24 = vld [vmem:[#allocation11 + $0x118] sm:$0xff] }
 0x430   : > { %2462 = vmatpush3.bf16.msra.mxu1 %v2461_v23  ;;  %2229 = vmatprep.mubr.msk.f32.mxu0 %vm2925_vm0, %v2923_v0  ;;  %v2518_v23 = vpack.c.bf16 %v1632_v21, %v1631_v20  ;;  %v2521_v25 = vpack.c.bf16 %v1634_v24, %v1633_v22 }
 0x431   : > { %2463 = vmatprep.subr.bf16.mxu1 %v2924_v54  ;;  %2516 = vmatpush3.bf16.msra.mxu0 %v2515_v44 }
 0x434   : > { %2465 = vmatpush3.bf16.msra.mxu1 %v2464_v27  ;;  %v1636_v27 = vld [vmem:[#allocation11 + $0x128] sm:$0xff] }
 0x435   : > { %2466 = vmatprep.subr.bf16.mxu1 %v2924_v54 }
 0x438   : > { %2468 = vmatpush3.bf16.msra.mxu1 %v2467_v30  ;;  %v2527_v30 = vpack.c.bf16 %v1638_v29, %v1637_v28 }
 0x439   : > { %2469 = vmatprep.subr.bf16.mxu1 %v2924_v54 }
 0x43c   : > { %2471 = vmatpush3.bf16.msra.mxu1 %v2470_v48  ;;  %v2530_v48 = vpack.c.bf16 %v1640_v32, %v1639_v31 }
 0x43d   : > { %2472 = vmatprep.subr.bf16.mxu1 %v2924_v54 }
 0x440   : > { %2474 = vmatpush3.bf16.msra.mxu1 %v2473_v35  ;;  %v2533_v35 = vpack.c.bf16 %v1642_v34, %v1641_v33 }
 0x441   : > { %2475 = vmatprep.subr.bf16.mxu1 %v2924_v54 }
 0x444   : > { %2477 = vmatpush3.bf16.msra.mxu1 %v2476_v38  ;;  %v2536_v38 = vpack.c.bf16 %v1644_v37, %v1643_v36 }
 0x445   : > { %2478 = vmatprep.subr.bf16.mxu1 %v2924_v54 }
 0x448   : > { %2480 = vmatpush3.bf16.msra.mxu1 %v2479_v41  ;;  %v2539_v41 = vpack.c.bf16 %v1646_v40, %v1645_v39 }
 0x449   : > { %2487 = vmatprep.subr.bf16.mxu1 %v2924_v54 }
 0x4fa   : > { %v1386_v63 = vpop.f32.mrb[16].mxu0 }
 0x4fb   : > { %v2182_v47 = vpop.f32.mrb[17].mxu0 }
 0x4fe   : > { %v1145_v52 = vpop.f32.mrb[4].mxu1 }
 0x4ff   : > { %v2133_v53 = vpop.f32.mrb[5].mxu1  ;;  %2167 = vmatmul.mubr.f32.vlgmr.msra.gmra.mrb[6].mxu1 %v1145_v52 }
 0x500   : > { %2489 = vmatpush3.bf16.msra.mxu1 %v2488_v49  ;;  %2215 = vmatprep.mubr.msk.f32.mxu1 %vm2925_vm0, %v2923_v0 }
 0x501   : > { %2490 = vmatprep.subr.bf16.mxu1 %v2924_v54 }
 0x502   : > { %v1543_v58 = vpop.f32.mrb[18].mxu0 }
 0x503   : > { %v2224_v59 = vpop.f32.mrb[19].mxu0  ;;  %v1547_v60 = vsel %vm1064_vm1, %v1543_v58, -inf }
 0x504   : > { %2492 = vmatpush3.bf16.msra.mxu1 %v2491_v55  ;;  %1548 = vmax.xlane.f32.xlu1 %v1547_v60 }
 0x505   : > { %2493 = vmatprep.subr.bf16.mxu1 %v2924_v54 }
 0x508   : > { %2495 = vmatpush3.bf16.msra.mxu1 %v2494_v61 }
 0x509   : > { %2496 = vmatprep.subr.bf16.mxu1 %v2924_v54 }
 0x50c   : > { %2498 = vmatpush3.bf16.msra.mxu1 %v2497_v2 }
 0x50d   : > { %2499 = vmatprep.subr.bf16.mxu1 %v2924_v54 }
 0x510   : > { %2501 = vmatpush3.bf16.msra.mxu1 %v2500_v5 }
 0x511   : > { %2502 = vmatprep.subr.bf16.mxu1 %v2924_v54 }
 0x514   : > { %2504 = vmatpush3.bf16.msra.mxu1 %v2503_v8 }
 0x515   : > { %2505 = vmatprep.subr.bf16.mxu1 %v2924_v54 }
 0x518   : > { %2507 = vmatpush3.bf16.msra.mxu1 %v2506_v11 }
 0x519   : > { %2508 = vmatprep.subr.bf16.mxu1 %v2924_v54 }
 0x51c   : > { %2510 = vmatpush3.bf16.msra.mxu1 %v2509_v14 }
 0x51d   : > { %2517 = vmatprep.subr.bf16.mxu1 %v2924_v54 }
 0x51f   : > { %2216 = vmatmul.mubr.f32.vlgmr.msra.gmra.mrb[6].mxu1 %v1386_v63  ;;  %v1884_v63 = vld [vmem:[%s3423_s6] ss:$0 sm:$0xff] }
 0x520   : > { %2264 = vmatprep.mubr.msk.f32.mxu1 %vm2925_vm0, %v2923_v0  ;;  %2519 = vmatpush3.bf16.msra.mxu1 %v2518_v23  ;;  %v2524_v0 = vpack.c.bf16 %v1636_v27, %v1635_v26 }
 0x521   : > { %2520 = vmatprep.subr.bf16.mxu1 %v2924_v54 }
 0x524   : > { %2522 = vmatpush3.bf16.msra.mxu1 %v2521_v25 }
 0x525   : > { %2523 = vmatprep.subr.bf16.mxu1 %v2924_v54 }
 0x528   : > { %2525 = vmatpush3.bf16.msra.mxu1 %v2524_v0 }
 0x529   : > { %2526 = vmatprep.subr.bf16.mxu1 %v2924_v54 }
 0x52c   : > { %2528 = vmatpush3.bf16.msra.mxu1 %v2527_v30 }
 0x52d   : > { %2529 = vmatprep.subr.bf16.mxu1 %v2924_v54 }
 0x530   : > { %2531 = vmatpush3.bf16.msra.mxu1 %v2530_v48 }
 0x531   : > { %2532 = vmatprep.subr.bf16.mxu1 %v2924_v54 }
 0x534   : > { %2534 = vmatpush3.bf16.msra.mxu1 %v2533_v35 }
 0x535   : > { %2535 = vmatprep.subr.bf16.mxu1 %v2924_v54 }
 0x538   : > { %2537 = vmatpush3.bf16.msra.mxu1 %v2536_v38 }
 0x539   : > { %2538 = vmatprep.subr.bf16.mxu1 %v2924_v54 }
 0x53c   : > { %2540 = vmatpush3.bf16.msra.mxu1 %v2539_v41 }
 0x591   : > { %v1549_v15 = vpop.xlane.xlu1 %1548 }
 0x592   : > { %v1550_v16 = vsub.f32 %v1543_v58, %v1549_v15 }
 0x594   : > { %v1551_v17 = vmul.f32 1.442695, %v1550_v16 }
 0x596   : > { %2653 = vpow2.f32 %v1551_v17 }
 0x5a0   : > { %v2654_v18 = vpop.eup %2653 }
 0x5a1   : > { %v1553_v19 = vsel %vm1064_vm1, %v2654_v18, 0.0 }
 0x5a2   : > { %1554 = vadd.xlane.f32.xlu1 %v1553_v19 }
 0x62f   : > { %v1555_v42 = vpop.xlane.xlu1 %1554 }
 0x630   : > { %2655 = vrcp.f32 %v1555_v42 }
 0x63a   : > { %v2656_v43 = vpop.eup %2655 }
 0x63b   : > { %v1557_v44 = vmul.f32 %v2656_v43, %v2654_v18 }
 0x63d   : > { %2230 = vmatmul.mubr.msk.f32.vlgmr.msra.gmra.mrb[20].mxu0 %vm1064_vm1, %v1557_v44 }
 0x710   : > { %v1627_v45 = vpop.f32.mrb[20].mxu0 }
 0x711   : > { %v2231_v46 = vpop.f32.mrb[21].mxu0  ;;  %2265 = vmatmul.mubr.f32.vlgmr.msra.gmra.mrb[6].mxu1 %v1627_v45 }
 0x7e4   : > { %v1713_v54 = vpop.f32.mrb[6].mxu1 }
 0x7e5   : > { %v2541_v47 = vadd.f32 %v1884_v63, %v1713_v54  ;;  %v2266_v49 = vpop.f32.mrb[7].mxu1 }
 0x7e7   : > { %1718 = vst [vmem:[%s391_s20] sm:$0xff] %v2541_v47 }
 0x7e8   : > { %2842 = shalt.err (!%p2839_p1)
}
 0x7e9   : > { %s2843_s23 = scalar_lea.hbm %s3373_s3, 128  ;;  %s2847_s14 = scalar_lea.hbm %s3424_s7, 256 }
 0x7ea   : > { %p2844_p11 = scmp.ne.s32.totalorder %s3373_s3, %s2843_s23  ;;  %p2848_p3 = scmp.lt.u32.totalorder %s3373_s3, %s3424_s7 }
 0x7eb   : > { %p2849_p13 = scmp.lt.u32.totalorder %s2847_s14, %s2843_s23  ;;  %p2851_p6 = scmp.lt.u32.totalorder %s2843_s23, %s3373_s3 }
 0x7ec   : > { %p2845_p8 = pnand %p2844_p11, %p3455_p2 }
 0x7ed   : > { %p2850_p0 = por %p2849_p13, %p2848_p3 }
 0x7ee   : > { %p2846_p12 = pneg %p2845_p8 }
 0x7ef   : > { %p2852_p4 = por %p2851_p6, %p2850_p0 }
 0x7f1   : > { %p2853_p10 = pnand %p2852_p4, %p2846_p12 }
 0x7f3   : > { %2856 = shalt.err (!%p2853_p10)
}
 0x7f4   : > { %2566 = dma.vmem_to_hbm [thread:$0]  (%p3455_p2), %s3375_s21, 128, %s3373_s3, %s1720_s2  }
 0x7f5 PF: > { %s1745_s22 = sand.u32 1, %s2899_s24   ;;  %p3456_p5 = scmp.ne.s32.totalorder %s3442_s17, 0 }
 0x7f6   : > { %p3457_p7 = scmp.ge.s32.totalorder %s2911_s27, 2  ;;  %s1746_s13 = scalar_lea.sflag [#allocation4], %s1745_s22 }
 0x7f8   : > { %p2589_p9 = pnand %p3457_p7, %p3456_p5 }
 0x7fa   : > { %2894 = dma.done.wait (!%p2589_p9), %s1746_s13, 128  }
 0x7fb   : > { %2896 = vsyncadd (!%p2589_p9), %s1746_s13, 4294967168  ;;  %p25_p1 = scmp.ge.s32.totalorder %s3119_s29, 4   ;;  %s3458_s24 = smov %s2903_s25 }
 0x7fc   : > { %s3459_s25 = smov %s2907_s26  ;;  %s3460_s26 = smov %s3130_s11 }
 0x7fd   : > { %s3461_s27 = smov %s3119_s29  ;;  %27 = sbr.rel (!%p25_p1) target bundleno = 13 (0xd), region = 122 }
 0x804   :  { %1751 = vsyncpa [#allocation3], 1 }
 0x805   :  { %1753 = vsyncpa [#allocation3 + $0x1], 1 }
 0x806   :  { %1754 = vsyncpa [#allocation6], 1 }
 0x807   :  { %1756 = vsyncpa [#allocation6 + $0x1], 1 }
 0x808   :  { %1757 = vsyncpa [#allocation9], 1 }
 0x809   :  { %1758 = vsyncpa [#allocation12], 1 }
 0x80a   :  { %1759 = vsyncpa [#allocation4], 1 }
 0x80b   :  { %1761 = vsyncpa [#allocation4 + $0x1], 1 }

</bundles_post_ra>
